<compile_context>
chip_gen: v6e
topology: v6e:2x2x1
jax: 0.10.0
libtpu: 0.0.40
codegen_flags: <defaults>
</compile_context>

<pallas_src>
import functools

import jax
import jax.numpy as jnp
from jax import lax
from jax.experimental import pallas as pl
from jax.experimental.pallas import tpu as pltpu


# ---------------------------------------------------------------------------
# Kernels
# ---------------------------------------------------------------------------
def _matmul_kernel_whole(x_ref, w_ref, o_ref, *, compute_dtype, precision):
    """Single-step kernel: whole problem resident in VMEM."""
    x = x_ref[...].astype(compute_dtype)
    w = w_ref[...].astype(compute_dtype)
    o_ref[...] = jnp.dot(
        x, w, preferred_element_type=jnp.float32, precision=precision
    ).astype(o_ref.dtype)


def _matmul_kernel_accum_out(x_ref, w_ref, o_ref, *, compute_dtype, precision):
    """Tiled kernel, f32 output: accumulate directly into the resident output block."""
    @pl.when(pl.program_id(2) == 0)
    def _():
        o_ref[...] = jnp.zeros_like(o_ref)

    x = x_ref[...].astype(compute_dtype)
    w = w_ref[...].astype(compute_dtype)
    o_ref[...] += jnp.dot(
        x, w, preferred_element_type=jnp.float32, precision=precision
    )


def _matmul_kernel_scratch(x_ref, w_ref, o_ref, acc_ref, *, compute_dtype, precision):
    """Tiled kernel, non-f32 output: f32 scratch accumulator, cast on last k step."""
    @pl.when(pl.program_id(2) == 0)
    def _():
        acc_ref[...] = jnp.zeros_like(acc_ref)

    x = x_ref[...].astype(compute_dtype)
    w = w_ref[...].astype(compute_dtype)
    acc_ref[...] += jnp.dot(
        x, w, preferred_element_type=jnp.float32, precision=precision
    )

    @pl.when(pl.program_id(2) == pl.num_programs(2) - 1)
    def _():
        o_ref[...] = acc_ref[...].astype(o_ref.dtype)


# ---------------------------------------------------------------------------
# Generation-aware budgets & tile selection
# ---------------------------------------------------------------------------
def _round_up(x, m):
    return ((x + m - 1) // m) * m


def _pick_tile(dim, preferences):
    """Largest preferred tile that evenly divides `dim`; fall back to full dim."""
    for p in preferences:
        if dim % p == 0:
            return p
    return dim


def _tpu_budgets():
    """Per-generation VMEM budget and tile preferences."""
    kind = ""
    try:
        kind = jax.devices()[0].device_kind.lower()
    except Exception:
        pass
    if "v7" in kind:
        # 64 MiB physical VMEM, 2 TCs/chip -> modest budget, cap tk.
        return dict(vmem_limit=48 << 20, mn_prefs=(512, 256, 128),
                    tk_prefs=(1024, 512, 256, 128))
    if "v6" in kind:
        # 128 MiB physical VMEM -> big tiles, deep K.
        return dict(vmem_limit=96 << 20, mn_prefs=(512, 256, 128),
                    tk_prefs=(2048, 1024, 512, 256, 128))
    if "v5" in kind:
        # 128 MiB physical VMEM, lower HBM BW -> big output tiles, deep-ish K.
        return dict(vmem_limit=64 << 20, mn_prefs=(512, 256, 128),
                    tk_prefs=(1024, 512, 256, 128))
    # Unknown generation: conservative defaults (safe on every chip).
    return dict(vmem_limit=32 << 20, mn_prefs=(256, 128),
                tk_prefs=(1024, 512, 256, 128))


def _select_tiles(M, N, K, out_is_f32, cfg):
    """Pick (tm, tn, tk) and padded dims, keeping double-buffered tiles in budget."""
    budget = int(cfg["vmem_limit"] * 0.75)

    # --- M tile: for moderate M use the full extent (avoids re-reading W per M-tile).
    if M <= 512:
        m_pad = _round_up(M, 8)
        tm = m_pad
    else:
        m_pad = _round_up(M, 256)
        tm = _pick_tile(m_pad, (512, 256))

    # --- N tile: lane-dense multiple of 128.
    n_pad = _round_up(N, 128)
    tn = _pick_tile(n_pad, cfg["mn_prefs"])  # 128 always divides n_pad

    # --- K tile: as deep as fits the VMEM budget with double-buffered operands.
    k_pad = _round_up(K, 128)

    def vmem_bytes(tk_):
        operands = 2 * (tm * tk_ + tk_ * tn) * 4      # double-buffered x, w (f32)
        out = 2 * tm * tn * 4                          # output block (+headroom)
        scratch = 0 if out_is_f32 else tm * tn * 4
        return operands + out + scratch

    tk = 128
    for p in cfg["tk_prefs"]:
        if k_pad % p == 0 and vmem_bytes(p) <= budget:
            tk = p
            break

    return tm, tn, tk, m_pad, n_pad, k_pad


# Whole-problem fast path budget (bytes of x + w + out). Kept small so anything
# worth splitting across v7x's two TensorCores goes through the tiled path.
_FASTPATH_BYTES = 2 * 1024 * 1024


# ---------------------------------------------------------------------------
# Wrapper
# ---------------------------------------------------------------------------
def simple_matmul(x, w, *, use_bf16_operands=False, precision=None,
                  force_tiled=False, tm=None, tn=None, tk=None):
    M, K = x.shape
    K2, N = w.shape
    assert K == K2, "inner dims must match"
    out_dtype = x.dtype
    itemsize = jnp.dtype(x.dtype).itemsize
    out_itemsize = jnp.dtype(out_dtype).itemsize

    # Operand feed / precision policy:
    #  * default: f32 operands with Precision.HIGHEST -> faithful f32 numerics.
    #  * use_bf16_operands=True: cast tiles to bf16 inside the kernel (full-rate
    #    MXU on v6e/v7x), accumulate in f32.  Accuracy tradeoff, opt-in.
    compute_dtype = jnp.bfloat16 if use_bf16_operands else x.dtype
    if precision is None:
        if not use_bf16_operands and jnp.dtype(x.dtype) == jnp.dtype(jnp.float32):
            precision = lax.Precision.HIGHEST
        else:
            precision = lax.Precision.DEFAULT

    cost = pl.CostEstimate(
        flops=2 * M * N * K,
        transcendentals=0,
        bytes_accessed=itemsize * (M * K + K * N) + out_itemsize * M * N,
    )
    total_bytes = itemsize * (M * K + K * N) + out_itemsize * M * N

    # -------- fast path: whole problem fits comfortably in VMEM, no grid -------
    if not force_tiled and total_bytes <= _FASTPATH_BYTES:
        kernel = functools.partial(
            _matmul_kernel_whole, compute_dtype=compute_dtype, precision=precision)
        return pl.pallas_call(
            kernel,
            out_shape=jax.ShapeDtypeStruct((M, N), out_dtype),
            in_specs=[
                pl.BlockSpec((M, K), lambda: (0, 0)),
                pl.BlockSpec((K, N), lambda: (0, 0)),
            ],
            out_specs=pl.BlockSpec((M, N), lambda: (0, 0)),
            cost_estimate=cost,
        )(x, w)

    # -------- general tiled path ----------------------------------------------
    cfg = _tpu_budgets()
    out_is_f32 = jnp.dtype(out_dtype) == jnp.dtype(jnp.float32)

    if tm is None or tn is None or tk is None:
        a_tm, a_tn, a_tk, m_pad, n_pad, k_pad = _select_tiles(M, N, K, out_is_f32, cfg)
        tm = tm if tm is not None else a_tm
        tn = tn if tn is not None else a_tn
        tk = tk if tk is not None else a_tk
        m_pad = _round_up(M, tm)
        n_pad = _round_up(N, tn)
        k_pad = _round_up(K, tk)
    else:
        m_pad = _round_up(M, tm)
        n_pad = _round_up(N, tn)
        k_pad = _round_up(K, tk)

    # Zero-pad to tile multiples (padded K columns/rows contribute zeros to the dot).
    x_p = x if (m_pad, k_pad) == (M, K) else jnp.pad(x, ((0, m_pad - M), (0, k_pad - K)))
    w_p = w if (k_pad, n_pad) == (K, N) else jnp.pad(w, ((0, k_pad - K), (0, n_pad - N)))

    grid = (m_pad // tm, n_pad // tn, k_pad // tk)

    if out_is_f32:
        kernel = functools.partial(
            _matmul_kernel_accum_out, compute_dtype=compute_dtype, precision=precision)
        scratch_shapes = []
    else:
        kernel = functools.partial(
            _matmul_kernel_scratch, compute_dtype=compute_dtype, precision=precision)
        scratch_shapes = [pltpu.VMEM((tm, tn), jnp.float32)]

    out_p = pl.pallas_call(
        kernel,
        out_shape=jax.ShapeDtypeStruct((m_pad, n_pad), out_dtype),
        grid=grid,
        in_specs=[
            pl.BlockSpec((tm, tk), lambda i, j, k: (i, k)),
            pl.BlockSpec((tk, tn), lambda i, j, k: (k, j)),
        ],
        out_specs=pl.BlockSpec((tm, tn), lambda i, j, k: (i, j)),
        scratch_shapes=scratch_shapes,
        compiler_params=pltpu.CompilerParams(
            dimension_semantics=("parallel", "parallel", "arbitrary"),
            vmem_limit_bytes=cfg["vmem_limit"],
        ),
        cost_estimate=cost,
    )(x_p, w_p)

    if (m_pad, n_pad) != (M, N):
        out_p = out_p[:M, :N]
    return out_p


# ---------------------------------------------------------------------------
# Self-test
# ---------------------------------------------------------------------------
if __name__ == "__main__":
    # SimpleMatMul(size=256, dtype=float32); deterministic init in-script.
    size = 256
    M = 128  # rows of x
    dtype = jnp.float32

    key = jax.random.PRNGKey(0)
    kx, kw = jax.random.split(key)
    x = jax.random.normal(kx, (M, size), dtype=dtype)
    weight = jax.random.normal(kw, (size, size), dtype=dtype)  # ~ torch.randn(size, size)

    ref = jnp.dot(x, weight, precision=lax.Precision.HIGHEST)

    # 1) Fast path (single un-gridded call, f32 HIGHEST) -- what the workload hits.
    out = jax.block_until_ready(simple_matmul(x, weight))
    assert out.shape == (M, size)
    assert jnp.allclose(out, ref, atol=1e-3, rtol=1e-3)

    # 2) Tiled path, accumulate-into-output variant with user tiles.
    out_tiled = jax.block_until_ready(
        simple_matmul(x, weight, force_tiled=True, tm=128, tn=128, tk=128)
    )
    assert jnp.allclose(out_tiled, ref, atol=1e-3, rtol=1e-3)

    # 3) Tiled path with auto (generation-aware) tiles + padding on ragged shapes.
    kx2, kw2 = jax.random.split(jax.random.PRNGKey(1))
    x2 = jax.random.normal(kx2, (192, 200), dtype=dtype)
    w2 = jax.random.normal(kw2, (200, 300), dtype=dtype)
    ref2 = jnp.dot(x2, w2, precision=lax.Precision.HIGHEST)
    out2 = jax.block_until_ready(simple_matmul(x2, w2, force_tiled=True))
    assert out2.shape == (192, 300)
    assert jnp.allclose(out2, ref2, atol=1e-3, rtol=1e-3)

    # 4) Opt-in bf16 operand feed (full-rate MXU); looser tolerance.
    out_bf16 = jax.block_until_ready(simple_matmul(x, weight, use_bf16_operands=True))
    assert jnp.allclose(out_bf16, ref, atol=1.0, rtol=5e-2)

    print("KERNEL_OK")
</pallas_src>

<mosaic_0001>
module attributes {stable_mosaic.version = 11 : i64} {
  func.func @_matmul_kernel_whole(%arg0: memref<128x256xf32, #tpu.memory_space<vmem>>, %arg1: memref<256x256xf32, #tpu.memory_space<vmem>>, %arg2: memref<128x256xf32, #tpu.memory_space<vmem>>) attributes {dimension_semantics = [], scalar_prefetch = 0 : i64, scratch_operands = 0 : i64, tpu.core_type = #tpu.core_type<tc>} {
    %c0 = arith.constant 0 : index
    %c0_0 = arith.constant 0 : index
    %0 = vector.load %arg0[%c0, %c0_0] : memref<128x256xf32, #tpu.memory_space<vmem>>, vector<128x256xf32>
    %c0_1 = arith.constant 0 : index
    %c0_2 = arith.constant 0 : index
    %1 = vector.load %arg1[%c0_1, %c0_2] : memref<256x256xf32, #tpu.memory_space<vmem>>, vector<256x256xf32>
    %cst = arith.constant dense<0.000000e+00> : vector<128x256xf32>
    %2 = tpu.matmul %0, %1, %cst {dimension_numbers = #tpu.dot_dimension_numbers<[1], [0], [0], [1], [0, 0, 1, 1], [], []>, precision = #tpu.contract_precision<fp32>} : vector<128x256xf32>, vector<256x256xf32>, vector<128x256xf32> -> vector<128x256xf32>
    %c0_3 = arith.constant 0 : index
    %c0_4 = arith.constant 0 : index
    %3 = vector.load %arg2[%c0_3, %c0_4] : memref<128x256xf32, #tpu.memory_space<vmem>>, vector<128x256xf32>
    tpu.vector_store %arg2[%c0_3, %c0_4], %2 {strides = array<i32>} : memref<128x256xf32, #tpu.memory_space<vmem>>, vector<128x256xf32>,
    return
  }
}

</mosaic_0001>

<bundles_post_ra>
// kernel: tpu_custom_call.1
= control target key start
LH: loop header
LB: loop body
LE: loop exit
PB: predicated region body
PF: predicated region fallthrough
CT: control target
= control target key end

     0   :  { %7 = vsyncpa [#allocation3], 0  ;;  %s4457_s0 = inlined_call_operand.hbm [shape: f32[128,256], index: 0, kind: input, shape index: {}]   ;;  %s4458_s1 = inlined_call_operand.hbm [shape: f32[256,256], index: 1, kind: input, shape index: {}]   ;;  %s4459_s2 = inlined_call_operand.hbm [shape: f32[128,256], index: 2, kind: output, shape index: {}]  }
   0x1   :  { %8 = vsyncpa [#allocation6], 0 }
   0x2   :  { %9 = vsyncpa [#allocation4], 0  ;;  %s2471_s9 = smov [#allocation2]  }
   0x3   :  { %s15_s10 = sshll.u32 %s2471_s9, 4  ;;  %s16_s10 = int_to_ptr.vmem [resolvable:$true] %s15_s10 }
   0x4   :  { %s2413_s11 = scalar_lea.vmem %s16_s10, 4096  ;;  %p2418_p1 = scmp.lt.s32.totalorder %s16_s10, %s16_s10 }
   0x5   :  { %p2414_p0 = scmp.ne.s32.totalorder %s16_s10, %s2413_s11  ;;  %p2419_p2 = scmp.lt.s32.totalorder %s2413_s11, %s2413_s11 }
   0x7   :  { %p2420_p3 = por %p2419_p2, %p2418_p1 }
   0x9   :  { %p2421_p4 = pnand %p2420_p3, %p2414_p0 }
   0xb   :  { %2424 = shalt.err (!%p2421_p4)
}
   0xc   :  { %s2472_s12 = smov 256   ;;  %s2473_s13 = smov 16  }
   0xd   :  { %21 = dma.hbm_to_vmem [thread:$0]  %s4457_s0, 4096, %s16_s10, [#allocation3], %s2472_s12, %s2472_s12, %s2473_s13  }
   0xe   :  { %s2474_s16 = smov [#allocation5]  }
   0xf   :  { %s27_s17 = sshll.u32 %s2474_s16, 4  ;;  %s28_s17 = int_to_ptr.vmem [resolvable:$true] %s27_s17 }
  0x10   :  { %s2433_s18 = scalar_lea.vmem %s28_s17, 8192  ;;  %p2438_p6 = scmp.lt.s32.totalorder %s28_s17, %s28_s17 }
  0x11   :  { %p2434_p5 = scmp.ne.s32.totalorder %s28_s17, %s2433_s18  ;;  %p2439_p7 = scmp.lt.s32.totalorder %s2433_s18, %s2433_s18 }
  0x13   :  { %p2440_p8 = por %p2439_p7, %p2438_p6 }
  0x15   :  { %p2441_p9 = pnand %p2440_p8, %p2434_p5 }
  0x17   :  { %2444 = shalt.err (!%p2441_p9)
}
  0x18   :  { %33 = dma.hbm_to_vmem [thread:$0]  %s4458_s1, 8192, %s28_s17, [#allocation6], %s2472_s12, %s2472_s12, %s2473_s13  }
  0x19   :  { %2465 = dma.done.wait [#allocation3], 4096  }
  0x1a   :  { %2466 = vsyncadd [#allocation3], 4294963200 }
  0x1b   :  { %2467 = dma.done.wait [#allocation6], 8192  }
  0x1c   :  { %2468 = vsyncadd [#allocation6], 4294959104  ;;  %v103_v0 = vld [vmem:[#allocation5 + $0xf8] sm:$0xff]  ;;  %v102_v1 = vld [vmem:[#allocation5 + $0xf0] sm:$0xff]  ;;  %s2475_s0 = smov [#allocation7]  }
  0x1d   :  { %v101_v2 = vld [vmem:[#allocation5 + $0xe8] sm:$0xff]  ;;  %v2503_v3 = vand.u32 4294901760, %v103_v0  ;;  %v2505_v4 = vand.u32 4294901760, %v102_v1  ;;  %v100_v6 = vld [vmem:[#allocation5 + $0xe0] sm:$0xff]  ;;  %v99_v7 = vld [vmem:[#allocation5 + $0xd8] sm:$0xff]  ;;  %s2387_s1 = sshll.u32 %s2475_s0, 4  ;;  %s2388_s1 = int_to_ptr.vmem [resolvable:$true] %s2387_s1 }
  0x1e   :  { %v2507_v5 = vand.u32 4294901760, %v101_v2  ;;  %v98_v8 = vld [vmem:[#allocation5 + $0xd0] sm:$0xff]  ;;  %v2509_v9 = vand.u32 4294901760, %v100_v6  ;;  %v2511_v10 = vand.u32 4294901760, %v99_v7  ;;  %v97_v12 = vld [vmem:[#allocation5 + $0xc8] sm:$0xff]  ;;  %v96_v13 = vld [vmem:[#allocation5 + $0xc0] sm:$0xff]  ;;  %p2450_p11 = scmp.lt.s32.totalorder %s2388_s1, %s2388_s1 }
  0x1f   :  { %v2513_v11 = vand.u32 4294901760, %v98_v8  ;;  %v95_v14 = vld [vmem:[#allocation5 + $0xb8] sm:$0xff]  ;;  %137 = vmatprep.subr.mxu0 %v2503_v3  ;;  %v2516_v15 = vand.u32 4294901760, %v97_v12  ;;  %v2518_v16 = vand.u32 4294901760, %v96_v13  ;;  %v2523_v18 = vsub.f32 %v103_v0, %v2503_v3  ;;  %v2525_v19 = vld [vmem:[#allocation5 + $0xb0] sm:$0xff]  ;;  %v2527_v20 = vld [vmem:[#allocation5 + $0xa8] sm:$0xff] }
  0x20   :  { %v2520_v17 = vand.u32 4294901760, %v95_v14  ;;  %v2529_v21 = vld [vmem:[#allocation5 + $0xa0] sm:$0xff]  ;;  %139 = vmatpush1.msra.mxu0 %v2505_v4  ;;  %v2533_v22 = vand.u32 4294901760, %v2525_v19  ;;  %v2536_v23 = vsub.f32 %v102_v1, %v2505_v4  ;;  %v2539_v24 = vand.u32 4294901760, %v2527_v20  ;;  %v2544_v26 = vld [vmem:[#allocation5 + $0x98] sm:$0xff]  ;;  %v2546_v27 = vld [vmem:[#allocation5 + $0x90] sm:$0xff] }
  0x21   :  { %4808 = vst [vmem:[#allocation11_spill] sm:$0xff] %v2523_v18  ;;  %v2542_v25 = vsub.f32 %v101_v2, %v2507_v5  ;;  %v2548_v28 = vld [vmem:[#allocation5 + $0x88] sm:$0xff]  ;;  %141 = vmatprep.subr.mxu0 %v2507_v5  ;;  %v4473_v29 = vand.u32 4294901760, %v2523_v18  ;;  %v2553_v30 = vand.u32 4294901760, %v2529_v21  ;;  %v2556_v31 = vsub.f32 %v100_v6, %v2509_v9  ;;  %v2570_v37 = vld [vmem:[#allocation5 + $0x80] sm:$0xff]  ;;  %v2594_v46 = vld [vmem:[#allocation5 + $0x78] sm:$0xff] }
  0x22   :  { %4809 = vst [vmem:[#allocation12_spill] sm:$0xff] %v2533_v22  ;;  %4810 = vst [vmem:[#allocation13_spill] sm:$0xff] %v2536_v23  ;;  %v2559_v32 = vand.u32 4294901760, %v2544_v26  ;;  %143 = vmatpush1.msra.mxu0 %v2509_v9  ;;  %v4471_v33 = vand.u32 4294901760, %v2536_v23  ;;  %v2565_v35 = vsub.f32 %v99_v7, %v2511_v10  ;;  %v2568_v36 = vand.u32 4294901760, %v2546_v27  ;;  %v2604_v51 = vld [vmem:[#allocation5 + $0x70] sm:$0xff] }
  0x23   :  { %4811 = vst [vmem:[#allocation14_spill] sm:$0xff] %v2539_v24  ;;  %4812 = vst [vmem:[#allocation15_spill] sm:$0xff] %v2542_v25  ;;  %v4470_v34 = vand.u32 4294901760, %v2542_v25  ;;  %145 = vmatprep.subr.mxu0 %v2511_v10  ;;  %v524_v38 = vsub.f32 %v2523_v18, %v4473_v29  ;;  %v4468_v39 = vand.u32 4294901760, %v2556_v31  ;;  %v2578_v40 = vsub.f32 %v98_v8, %v2513_v11  ;;  %v2611_v56 = vld [vmem:[#allocation5 + $0x68] sm:$0xff]  ;;  %v2623_v61 = vld [vmem:[#allocation5 + $0x60] sm:$0xff] }
  0x24   :  { %4813 = vst [vmem:[#allocation16_spill] sm:$0xff] %v2553_v30  ;;  %4814 = vst [vmem:[#allocation17_spill] sm:$0xff] %v2556_v31  ;;  %v2581_v41 = vand.u32 4294901760, %v2548_v28  ;;  %147 = vmatpush1.msra.mxu0 %v2513_v11  ;;  %v530_v42 = vsub.f32 %v2536_v23, %v4471_v33  ;;  %v4466_v44 = vand.u32 4294901760, %v2565_v35  ;;  %v2592_v45 = vsub.f32 %v97_v12, %v2516_v15  ;;  %v2635_v2 = vld [vmem:[#allocation5 + $0x58] sm:$0xff]  ;;  %s2445_s21 = scalar_lea.vmem %s2388_s1, 4096 }
  0x25   :  { %4815 = vst [vmem:[#allocation18_spill] sm:$0xff] %v2559_v32  ;;  %4816 = vst [vmem:[#allocation19_spill] sm:$0xff] %v2568_v36  ;;  %v536_v43 = vsub.f32 %v2542_v25, %v4470_v34  ;;  %149 = vmatprep.subr.mxu0 %v2516_v15  ;;  %v525_v47 = vand.u32 4294901760, %v524_v38  ;;  %v542_v48 = vsub.f32 %v2556_v31, %v4468_v39  ;;  %v4465_v49 = vand.u32 4294901760, %v2578_v40  ;;  %v2726_v39 = vld [vmem:[#allocation5 + $0x28] sm:$0xff]  ;;  %v2736_v34 = vld [vmem:[#allocation5 + $0x20] sm:$0xff]  ;;  %p2446_p10 = scmp.ne.s32.totalorder %s2388_s1, %s2445_s21  ;;  %p2451_p12 = scmp.lt.s32.totalorder %s2445_s21, %s2445_s21 }
  0x26   :  { %4817 = vst [vmem:[#allocation20_spill] sm:$0xff] %v2578_v40  ;;  %4818 = vst [vmem:[#allocation21_spill] sm:$0xff] %v2581_v41  ;;  %v2602_v50 = vand.u32 4294901760, %v2570_v37  ;;  %151 = vmatpush1.msra.mxu0 %v2518_v16  ;;  %v531_v52 = vand.u32 4294901760, %v530_v42  ;;  %v548_v54 = vsub.f32 %v2565_v35, %v4466_v44  ;;  %v4463_v55 = vand.u32 4294901760, %v2592_v45 }
  0x27   :  { %v537_v53 = vand.u32 4294901760, %v536_v43  ;;  %153 = vmatprep.subr.mxu0 %v2520_v17  ;;  %526 = vmatprep.subr.mxu1 %v525_v47  ;;  %v543_v57 = vand.u32 4294901760, %v542_v48  ;;  %v554_v58 = vsub.f32 %v2578_v40, %v4465_v49  ;;  %v2618_v59 = vsub.f32 %v96_v13, %v2518_v16  ;;  %v2646_v13 = vld [vmem:[#allocation5 + $0x50] sm:$0xff]  ;;  %p2452_p13 = por %p2451_p12, %p2450_p11 }
  0x28   :  { %4819 = vst [vmem:[#allocation22_spill] sm:$0xff] %v2602_v50  ;;  %v2621_v60 = vand.u32 4294901760, %v2594_v46  ;;  %155 = vmatpush1.msra.mxu0 %v2533_v22  ;;  %532 = vmatpush1.msra.mxu1 %v531_v52  ;;  %v549_v62 = vand.u32 4294901760, %v548_v54  ;;  %v560_v63 = vsub.f32 %v2592_v45, %v4463_v55  ;;  %v2630_v0 = vsub.f32 %v95_v14, %v2520_v17  ;;  %v2713_v49 = vld [vmem:[#allocation5 + $0x30] sm:$0xff] }
  0x29   :  { %4820 = vst [vmem:[#allocation23_spill] sm:$0xff] %v2618_v59  ;;  %v2633_v1 = vand.u32 4294901760, %v2604_v51  ;;  %157 = vmatprep.subr.mxu0 %v2539_v24  ;;  %538 = vmatprep.subr.mxu1 %v537_v53  ;;  %v555_v6 = vand.u32 4294901760, %v554_v58  ;;  %v4461_v7 = vand.u32 4294901760, %v2618_v59  ;;  %v2641_v8 = vsub.f32 %v2525_v19, %v2533_v22  ;;  %p2453_p0 = pnand %p2452_p13, %p2446_p10 }
  0x2a   :  { %4821 = vst [vmem:[#allocation24_spill] sm:$0xff] %v2621_v60  ;;  %v2644_v12 = vand.u32 4294901760, %v2611_v56  ;;  %159 = vmatpush1.msra.mxu0 %v2553_v30  ;;  %544 = vmatpush1.msra.mxu1 %v543_v57  ;;  %v561_v14 = vand.u32 4294901760, %v560_v63  ;;  %v4460_v38 = vand.u32 4294901760, %v2630_v0  ;;  %v2652_v42 = vsub.f32 %v2527_v20, %v2539_v24  ;;  %v2669_v20 = vld [vmem:[#allocation5 + $0x48] sm:$0xff] }
  0x2b   :  { %4822 = vst [vmem:[#allocation25_spill] sm:$0xff] %v2633_v1  ;;  %v2655_v43 = vand.u32 4294901760, %v2623_v61  ;;  %161 = vmatprep.subr.mxu0 %v2559_v32  ;;  %550 = vmatprep.subr.mxu1 %v549_v62  ;;  %v566_v19 = vsub.f32 %v2618_v59, %v4461_v7  ;;  %v4462_v47 = vand.u32 4294901760, %v2641_v8  ;;  %v2664_v48 = vsub.f32 %v2529_v21, %v2553_v30 }
  0x2c   :  { %4823 = vst [vmem:[#allocation26_spill] sm:$0xff] %v2644_v12  ;;  %v2667_v52 = vand.u32 4294901760, %v2635_v2  ;;  %163 = vmatpush1.msra.mxu0 %v2568_v36  ;;  %556 = vmatpush1.msra.mxu1 %v555_v6  ;;  %v572_v53 = vsub.f32 %v2630_v0, %v4460_v38  ;;  %v4464_v54 = vand.u32 4294901760, %v2652_v42  ;;  %v2678_v57 = vsub.f32 %v2544_v26, %v2559_v32  ;;  %v2692_v38 = vld [vmem:[#allocation5 + $0x40] sm:$0xff] }
  0x2d   :  { %4824 = vst [vmem:[#allocation27_spill] sm:$0xff] %v2655_v43  ;;  %v2681_v21 = vand.u32 4294901760, %v2646_v13  ;;  %165 = vmatprep.subr.mxu0 %v2581_v41  ;;  %562 = vmatprep.subr.mxu1 %v561_v14  ;;  %v567_v58 = vand.u32 4294901760, %v566_v19  ;;  %v578_v62 = vsub.f32 %v2641_v8, %v4462_v47  ;;  %v4467_v63 = vand.u32 4294901760, %v2664_v48  ;;  %v2702_v47 = vld [vmem:[#allocation5 + $0x38] sm:$0xff] }
  0x2e   :  { %4825 = vst [vmem:[#allocation28_spill] sm:$0xff] %v2667_v52  ;;  %v2690_v6 = vsub.f32 %v2546_v27, %v2568_v36  ;;  %167 = vmatpush1.msra.mxu0 %v2602_v50  ;;  %v573_v26 = vand.u32 4294901760, %v572_v53  ;;  %v584_v14 = vsub.f32 %v2652_v42, %v4464_v54  ;;  %v4469_v19 = vand.u32 4294901760, %v2678_v57  ;;  %v2816_v36 = vld [vmem:[#allocation5 + $0x1f8] sm:$0xff] }
  0x2f   :  { %4826 = vst [vmem:[#allocation29_spill] sm:$0xff] %v2681_v21  ;;  %v2700_v7 = vand.u32 4294901760, %v2669_v20  ;;  %568 = vmatpush1.msra.mxu1 %v567_v58  ;;  %169 = vmatprep.subr.mxu0 %v2621_v60  ;;  %v579_v27 = vand.u32 4294901760, %v578_v62  ;;  %v590_v55 = vsub.f32 %v2664_v48, %v4467_v63  ;;  %v2711_v54 = vsub.f32 %v2548_v28, %v2581_v41 }
  0x30   :  { %v4472_v53 = vand.u32 4294901760, %v2690_v6  ;;  %574 = vmatprep.subr.mxu1 %v573_v26  ;;  %171 = vmatpush1.msra.mxu0 %v2633_v1  ;;  %v585_v44 = vand.u32 4294901760, %v584_v14  ;;  %v596_v58 = vsub.f32 %v2678_v57, %v4469_v19  ;;  %v2720_v62 = vand.u32 4294901760, %v2692_v38 }
  0x31   :  { %4827 = vst [vmem:[#allocation30_spill] sm:$0xff] %v2700_v7  ;;  %v2724_v63 = vsub.f32 %v2570_v37, %v2602_v50  ;;  %580 = vmatpush1.msra.mxu1 %v579_v27  ;;  %173 = vmatprep.subr.mxu0 %v2644_v12  ;;  %v591_v28 = vand.u32 4294901760, %v590_v55  ;;  %v4476_v14 = vand.u32 4294901760, %v2711_v54  ;;  %v2734_v19 = vand.u32 4294901760, %v2702_v47 }
  0x32   :  { %4828 = vst [vmem:[#allocation31_spill] sm:$0xff] %v2720_v62  ;;  %v602_v26 = vsub.f32 %v2690_v6, %v4472_v53  ;;  %586 = vmatprep.subr.mxu1 %v585_v44  ;;  %175 = vmatpush1.msra.mxu0 %v2655_v43  ;;  %v597_v37 = vand.u32 4294901760, %v596_v58  ;;  %v2742_v55 = vsub.f32 %v2594_v46, %v2621_v60  ;;  %v2745_v33 = vand.u32 4294901760, %v2713_v49  ;;  %v2747_v53 = vld [vmem:[#allocation5 + $0x18] sm:$0xff] }
  0x33   :  { %4829 = vst [vmem:[#allocation32_spill] sm:$0xff] %v2734_v19  ;;  %v4479_v27 = vand.u32 4294901760, %v2724_v63  ;;  %592 = vmatpush1.msra.mxu1 %v591_v28  ;;  %177 = vmatprep.subr.mxu0 %v2667_v52  ;;  %v608_v44 = vsub.f32 %v2711_v54, %v4476_v14  ;;  %v2755_v58 = vsub.f32 %v2604_v51, %v2633_v1  ;;  %v2758_v46 = vand.u32 4294901760, %v2726_v39  ;;  %v2772_v51 = vld [vmem:[#allocation5 + $0x10] sm:$0xff] }
  0x34   :  { %4830 = vst [vmem:[#allocation33_spill] sm:$0xff] %v2745_v33  ;;  %v603_v29 = vand.u32 4294901760, %v602_v26  ;;  %598 = vmatprep.subr.mxu1 %v597_v37  ;;  %179 = vmatpush1.msra.mxu0 %v2681_v21  ;;  %v2767_v60 = vsub.f32 %v2611_v56, %v2644_v12  ;;  %v2770_v14 = vand.u32 4294901760, %v2736_v34  ;;  %v2781_v26 = vand.u32 4294901760, %v2747_v53  ;;  %v2783_v56 = vld [vmem:[#allocation5 + $0x8] sm:$0xff] }
  0x35   :  { %4831 = vst [vmem:[#allocation34_spill] sm:$0xff] %v2755_v58  ;;  %4832 = vst [vmem:[#allocation35_spill] sm:$0xff] %v2758_v46  ;;  %v614_v28 = vsub.f32 %v2724_v63, %v4479_v27  ;;  %181 = vmatprep.subr.mxu0 %v2700_v7  ;;  %v609_v37 = vand.u32 4294901760, %v608_v44  ;;  %v2778_v27 = vsub.f32 %v2623_v61, %v2655_v43  ;;  %v4837_v50 = vand.u32 4294901760, %v2742_v55  ;;  %v2806_v44 = vld [vmem:[#allocation5] sm:$0xff] }
  0x36   :  { %4833 = vst [vmem:[#allocation36_spill] sm:$0xff] %v2767_v60  ;;  %4834 = vst [vmem:[#allocation37_spill] sm:$0xff] %v2770_v14  ;;  %604 = vmatpush1.msra.mxu1 %v603_v29  ;;  %183 = vmatpush1.msra.mxu0 %v2720_v62  ;;  %v2792_v1 = vsub.f32 %v2635_v2, %v2667_v52  ;;  %v4839_v61 = vand.u32 4294901760, %v2755_v58  ;;  %v2814_v41 = vand.u32 4294901760, %v2783_v56  ;;  %v2834_v24 = vand.u32 4294901760, %v2806_v44 }
  0x37   :  { %4835 = vst [vmem:[#allocation38_spill] sm:$0xff] %v2778_v27  ;;  %4836 = vst [vmem:[#allocation39_spill] sm:$0xff] %v2781_v26  ;;  %v615_v12 = vand.u32 4294901760, %v614_v28  ;;  %v620_v29 = vsub.f32 %v2742_v55, %v4837_v50  ;;  %610 = vmatprep.subr.mxu1 %v609_v37  ;;  %185 = vmatprep.subr.mxu0 %v2734_v19  ;;  %v2800_v28 = vand.u32 4294901760, %v2772_v51  ;;  %v4842_v37 = vand.u32 4294901760, %v2767_v60 }
  0x38   :  { %4838 = vst [vmem:[#allocation40_spill] sm:$0xff] %v2792_v1  ;;  %v626_v43 = vsub.f32 %v2755_v58, %v4839_v61  ;;  %v2804_v50 = vsub.f32 %v2646_v13, %v2681_v21  ;;  %187 = vmatpush1.msra.mxu0 %v2745_v33  ;;  %4843 = vst [vmem:[#allocation43_spill] sm:$0xff] %v2814_v41  ;;  %v4844_v13 = vand.u32 4294901760, %v2778_v27 }
  0x39   :  { %4840 = vst [vmem:[#allocation41_spill] sm:$0xff] %v2800_v28  ;;  %616 = vmatpush1.msra.mxu1 %v615_v12  ;;  %v621_v2 = vand.u32 4294901760, %v620_v29  ;;  %v632_v52 = vsub.f32 %v2767_v60, %v4842_v37  ;;  %189 = vmatprep.subr.mxu0 %v2758_v46  ;;  %v2825_v21 = vsub.f32 %v2669_v20, %v2700_v7  ;;  %v2827_v37 = vld [vmem:[#allocation5 + $0x1f0] sm:$0xff]  ;;  %4847 = vst [vmem:[#allocation45_spill] sm:$0xff] %v2834_v24  ;;  %v2840_v29 = vld [vmem:[#allocation5 + $0x1e8] sm:$0xff] }
  0x3a   :  { %4841 = vst [vmem:[#allocation42_spill] sm:$0xff] %v2804_v50  ;;  %v627_v32 = vand.u32 4294901760, %v626_v43  ;;  %v638_v12 = vsub.f32 %v2778_v27, %v4844_v13  ;;  %191 = vmatpush1.msra.mxu0 %v2770_v14  ;;  %v4846_v43 = vand.u32 4294901760, %v2792_v1  ;;  %v2838_v13 = vsub.f32 %v2692_v38, %v2720_v62 }
  0x3b   :  { %4845 = vst [vmem:[#allocation44_spill] sm:$0xff] %v2825_v21  ;;  %622 = vmatprep.subr.mxu1 %v621_v2  ;;  %v633_v61 = vand.u32 4294901760, %v632_v52  ;;  %193 = vmatprep.subr.mxu0 %v2781_v26  ;;  %v4849_v52 = vand.u32 4294901760, %v2804_v50  ;;  %v2859_v62 = vand.u32 4294901760, %v2827_v37 }
  0x3c   :  { %v644_v30 = vsub.f32 %v2792_v1, %v4846_v43  ;;  %4848 = vst [vmem:[#allocation46_spill] sm:$0xff] %v2838_v13  ;;  %628 = vmatpush1.msra.mxu1 %v627_v32  ;;  %v639_v20 = vand.u32 4294901760, %v638_v12  ;;  %v2848_v43 = vand.u32 4294901760, %v2816_v36  ;;  %v2850_v1 = vld [vmem:[#allocation5 + $0x1e0] sm:$0xff]  ;;  %195 = vmatpush1.msra.mxu0 %v2800_v28  ;;  %v2856_v12 = vsub.f32 %v2702_v47, %v2734_v19 }
  0x3d   :  { %v650_v2 = vsub.f32 %v2804_v50, %v4849_v52  ;;  %634 = vmatprep.subr.mxu1 %v633_v61  ;;  %4852 = vst [vmem:[#allocation49_spill] sm:$0xff] %v2859_v62  ;;  %v2861_v52 = vld [vmem:[#allocation5 + $0x1d8] sm:$0xff]  ;;  %197 = vmatprep.subr.mxu0 %v2814_v41  ;;  %v4853_v61 = vand.u32 4294901760, %v2825_v21  ;;  %v2869_v32 = vsub.f32 %v2713_v49, %v2745_v33  ;;  %v2872_v47 = vand.u32 4294901760, %v2840_v29  ;;  %v2886_v49 = vld [vmem:[#allocation5 + $0x1d0] sm:$0xff] }
  0x3e   :  { %4850 = vst [vmem:[#allocation47_spill] sm:$0xff] %v2848_v43  ;;  %v645_v38 = vand.u32 4294901760, %v644_v30  ;;  %4851 = vst [vmem:[#allocation48_spill] sm:$0xff] %v2856_v12  ;;  %640 = vmatpush1.msra.mxu1 %v639_v20  ;;  %199 = vmatpush1.msra.mxu0 %v2834_v24  ;;  %v4856_v19 = vand.u32 4294901760, %v2838_v13  ;;  %v2881_v50 = vsub.f32 %v2726_v39, %v2758_v46  ;;  %v2897_v39 = vld [vmem:[#allocation5 + $0x1c8] sm:$0xff] }
  0x3f   :  { %v651_v7 = vand.u32 4294901760, %v650_v2  ;;  %v656_v30 = vsub.f32 %v2825_v21, %v4853_v61  ;;  %4854 = vst [vmem:[#allocation50_spill] sm:$0xff] %v2869_v32  ;;  %4855 = vst [vmem:[#allocation51_spill] sm:$0xff] %v2872_v47  ;;  %v2884_v61 = vand.u32 4294901760, %v2850_v1  ;;  %201 = vmatprep.subr.mxu0 %v2848_v43  ;;  %v2895_v2 = vand.u32 4294901760, %v2861_v52 }
  0x40   :  { %646 = vmatprep.subr.mxu1 %v645_v38  ;;  %v662_v20 = vsub.f32 %v2838_v13, %v4856_v19  ;;  %4857 = vst [vmem:[#allocation52_spill] sm:$0xff] %v2881_v50  ;;  %v4522_v38 = vand.u32 4294901760, %v2869_v32  ;;  %v2892_v19 = vsub.f32 %v2736_v34, %v2770_v14  ;;  %v4861_v13 = vand.u32 4294901760, %v2856_v12  ;;  %203 = vmatpush2.msra.mxu0 %v2859_v62 }
  0x41   :  { %4858 = vst [vmem:[#allocation53_spill] sm:$0xff] %v2884_v61  ;;  %652 = vmatpush1.msra.mxu1 %v651_v7  ;;  %v657_v33 = vand.u32 4294901760, %v656_v30  ;;  %4860 = vst [vmem:[#allocation55_spill] sm:$0xff] %v2895_v2  ;;  %v2906_v30 = vsub.f32 %v2747_v53, %v2781_v26  ;;  %205 = vmatprep.subr.mxu0 %v2872_v47  ;;  %v2914_v14 = vand.u32 4294901760, %v2886_v49  ;;  %v2920_v7 = vld [vmem:[#allocation5 + $0x1c0] sm:$0xff] }
  0x42   :  { %4859 = vst [vmem:[#allocation54_spill] sm:$0xff] %v2892_v19  ;;  %v663_v46 = vand.u32 4294901760, %v662_v20  ;;  %v668_v21 = vsub.f32 %v2856_v12, %v4861_v13  ;;  %v674_v34 = vsub.f32 %v2869_v32, %v4522_v38  ;;  %v2918_v13 = vsub.f32 %v2772_v51, %v2800_v28  ;;  %207 = vmatpush2.msra.mxu0 %v2884_v61  ;;  %v2930_v32 = vld [vmem:[#allocation5 + $0x1b8] sm:$0xff] }
  0x43   :  { %4862 = vst [vmem:[#allocation56_spill] sm:$0xff] %v2906_v30  ;;  %658 = vmatprep.subr.mxu1 %v657_v33  ;;  %4863 = vst [vmem:[#allocation57_spill] sm:$0xff] %v2914_v14  ;;  %v4865_v33 = vand.u32 4294901760, %v2881_v50  ;;  %v2928_v20 = vand.u32 4294901760, %v2897_v39  ;;  %v4867_v51 = vand.u32 4294901760, %v2892_v19  ;;  %209 = vmatprep.subr.mxu0 %v2895_v2 }
  0x44   :  { %4864 = vst [vmem:[#allocation58_spill] sm:$0xff] %v2918_v13  ;;  %664 = vmatpush1.msra.mxu1 %v663_v46  ;;  %v669_v53 = vand.u32 4294901760, %v668_v21  ;;  %v675_v12 = vand.u32 4294901760, %v674_v34  ;;  %v2939_v46 = vsub.f32 %v2783_v56, %v2814_v41  ;;  %211 = vmatpush2.msra.mxu0 %v2914_v14  ;;  %v2952_v21 = vsub.f32 %v2806_v44, %v2834_v24  ;;  %v2975_v24 = vld [vmem:[#allocation5 + $0x198] sm:$0xff] }
  0x45   :  { %v680_v26 = vsub.f32 %v2881_v50, %v4865_v33  ;;  %4866 = vst [vmem:[#allocation59_spill] sm:$0xff] %v2928_v20  ;;  %v686_v28 = vsub.f32 %v2892_v19, %v4867_v51  ;;  %v2941_v33 = vld [vmem:[#allocation5 + $0x1b0] sm:$0xff]  ;;  %v4869_v50 = vand.u32 4294901760, %v2906_v30  ;;  %v2948_v51 = vand.u32 4294901760, %v2920_v7  ;;  %v2954_v19 = vld [vmem:[#allocation5 + $0x1a8] sm:$0xff]  ;;  %213 = vmatprep.subr.mxu0 %v2928_v20 }
  0x46   :  { %4868 = vst [vmem:[#allocation60_spill] sm:$0xff] %v2939_v46  ;;  %670 = vmatprep.subr.mxu1 %v669_v53  ;;  %4871 = vst [vmem:[#allocation62_spill] sm:$0xff] %v2952_v21  ;;  %v4872_v53 = vand.u32 4294901760, %v2918_v13  ;;  %v2962_v41 = vand.u32 4294901760, %v2930_v32 }
  0x47   :  { %v681_v38 = vand.u32 4294901760, %v680_v26  ;;  %v692_v34 = vsub.f32 %v2906_v30, %v4869_v50  ;;  %4870 = vst [vmem:[#allocation61_spill] sm:$0xff] %v2948_v51  ;;  %676 = vmatpush1.msra.mxu1 %v675_v12  ;;  %v687_v56 = vand.u32 4294901760, %v686_v28  ;;  %v2964_v30 = vld [vmem:[#allocation5 + $0x1a0] sm:$0xff]  ;;  %215 = vmatpush2.msra.mxu0 %v2948_v51  ;;  %v4545_v12 = vand.u32 4294901760, %v2952_v21 }
  0x48   :  { %v698_v26 = vsub.f32 %v2918_v13, %v4872_v53  ;;  %4873 = vst [vmem:[#allocation63_spill] sm:$0xff] %v2962_v41  ;;  %v2970_v28 = vsub.f32 %v2816_v36, %v2848_v43  ;;  %v2973_v53 = vand.u32 4294901760, %v2941_v33  ;;  %v4876_v13 = vand.u32 4294901760, %v2939_v46  ;;  %217 = vmatprep.subr.mxu0 %v2962_v41 }
  0x49   :  { %682 = vmatprep.subr.mxu1 %v681_v38  ;;  %v693_v44 = vand.u32 4294901760, %v692_v34  ;;  %v2983_v34 = vsub.f32 %v2827_v37, %v2859_v62  ;;  %v2986_v36 = vand.u32 4294901760, %v2954_v19  ;;  %v710_v43 = vsub.f32 %v2952_v21, %v4545_v12  ;;  %v3000_v37 = vld [vmem:[#allocation5 + $0x190] sm:$0xff] }
  0x4a   :  { %4874 = vst [vmem:[#allocation64_spill] sm:$0xff] %v2970_v28  ;;  %4875 = vst [vmem:[#allocation65_spill] sm:$0xff] %v2973_v53  ;;  %688 = vmatpush1.msra.mxu1 %v687_v56  ;;  %v699_v50 = vand.u32 4294901760, %v698_v26  ;;  %v704_v38 = vsub.f32 %v2939_v46, %v4876_v13  ;;  %219 = vmatpush2.msra.mxu0 %v2973_v53  ;;  %v2995_v13 = vsub.f32 %v2840_v29, %v2872_v47  ;;  %v3011_v29 = vld [vmem:[#allocation5 + $0x188] sm:$0xff] }
  0x4b   :  { %4877 = vst [vmem:[#allocation66_spill] sm:$0xff] %v2983_v34  ;;  %4878 = vst [vmem:[#allocation67_spill] sm:$0xff] %v2986_v36  ;;  %694 = vmatprep.subr.mxu1 %v693_v44  ;;  %v2998_v26 = vand.u32 4294901760, %v2964_v30  ;;  %v4556_v44 = vand.u32 4294901760, %v2983_v34  ;;  %221 = vmatprep.subr.mxu0 %v2986_v36  ;;  %v3006_v12 = vsub.f32 %v2850_v1, %v2884_v61  ;;  %v3009_v56 = vand.u32 4294901760, %v2975_v24 }
  0x4c   :  { %4879 = vst [vmem:[#allocation68_spill] sm:$0xff] %v2995_v13  ;;  %700 = vmatpush1.msra.mxu1 %v699_v50  ;;  %v705_v62 = vand.u32 4294901760, %v704_v38  ;;  %v711_v47 = vand.u32 4294901760, %v710_v43  ;;  %v4883_v21 = vand.u32 4294901760, %v2970_v28  ;;  %v3020_v38 = vsub.f32 %v2861_v52, %v2895_v2  ;;  %v3034_v50 = vld [vmem:[#allocation5 + $0x180] sm:$0xff] }
  0x4d   :  { %4880 = vst [vmem:[#allocation69_spill] sm:$0xff] %v2998_v26  ;;  %4881 = vst [vmem:[#allocation70_spill] sm:$0xff] %v3006_v12  ;;  %223 = vmatpush2.msra.mxu0 %v2998_v26  ;;  %v722_v1 = vsub.f32 %v2983_v34, %v4556_v44  ;;  %v3028_v43 = vand.u32 4294901760, %v3000_v37  ;;  %v3041_v61 = vand.u32 4294901760, %v3011_v29  ;;  %v3043_v34 = vld [vmem:[#allocation5 + $0x178] sm:$0xff]  ;;  %v4889_v27 = vand.u32 4294901760, %v3006_v12 }
  0x4e   :  { %4882 = vst [vmem:[#allocation71_spill] sm:$0xff] %v3009_v56  ;;  %v716_v46 = vsub.f32 %v2970_v28, %v4883_v21  ;;  %4884 = vst [vmem:[#allocation72_spill] sm:$0xff] %v3020_v38  ;;  %706 = vmatprep.subr.mxu1 %v705_v62  ;;  %225 = vmatprep.subr.mxu0 %v3009_v56  ;;  %v3032_v21 = vsub.f32 %v2886_v49, %v2914_v14  ;;  %v4887_v62 = vand.u32 4294901760, %v2995_v13 }
  0x4f   :  { %4885 = vst [vmem:[#allocation73_spill] sm:$0xff] %v3028_v43  ;;  %712 = vmatpush1.msra.mxu1 %v711_v47  ;;  %4888 = vst [vmem:[#allocation75_spill] sm:$0xff] %v3041_v61  ;;  %v723_v28 = vand.u32 4294901760, %v722_v1  ;;  %v734_v49 = vsub.f32 %v3006_v12, %v4889_v27  ;;  %227 = vmatpush2.msra.mxu0 %v3028_v43  ;;  %v4891_v14 = vand.u32 4294901760, %v3020_v38  ;;  %v3061_v27 = vand.u32 4294901760, %v3034_v50  ;;  %v3067_v12 = vld [vmem:[#allocation5 + $0x168] sm:$0xff] }
  0x50   :  { %4886 = vst [vmem:[#allocation74_spill] sm:$0xff] %v3032_v21  ;;  %v717_v52 = vand.u32 4294901760, %v716_v46  ;;  %v728_v2 = vsub.f32 %v2995_v13, %v4887_v62  ;;  %v3052_v46 = vsub.f32 %v2897_v39, %v2928_v20  ;;  %v3054_v62 = vld [vmem:[#allocation5 + $0x170] sm:$0xff]  ;;  %229 = vmatprep.subr.mxu0 %v3041_v61  ;;  %v3065_v47 = vsub.f32 %v2920_v7, %v2948_v51 }
  0x51   :  { %v740_v1 = vsub.f32 %v3020_v38, %v4891_v14  ;;  %4892 = vst [vmem:[#allocation77_spill] sm:$0xff] %v3061_v27  ;;  %v735_v39 = vand.u32 4294901760, %v734_v49  ;;  %v3074_v14 = vand.u32 4294901760, %v3043_v34  ;;  %v3076_v38 = vld [vmem:[#allocation5 + $0x160] sm:$0xff]  ;;  %231 = vmatpush2.msra.mxu0 %v3061_v27  ;;  %v3085_v49 = vand.u32 4294901760, %v3054_v62 }
  0x52   :  { %4890 = vst [vmem:[#allocation76_spill] sm:$0xff] %v3052_v46  ;;  %718 = vmatprep.subr.mxu1 %v717_v52  ;;  %v729_v44 = vand.u32 4294901760, %v728_v2  ;;  %4893 = vst [vmem:[#allocation78_spill] sm:$0xff] %v3065_v47  ;;  %v4894_v52 = vand.u32 4294901760, %v3032_v21  ;;  %v4579_v7 = vand.u32 4294901760, %v3065_v47  ;;  %v4898_v51 = vand.u32 4294901760, %v3052_v46 }
  0x53   :  { %724 = vmatpush2.msra.mxu1 %v723_v28  ;;  %4895 = vst [vmem:[#allocation79_spill] sm:$0xff] %v3074_v14  ;;  %v741_v13 = vand.u32 4294901760, %v740_v1  ;;  %v3082_v28 = vsub.f32 %v2930_v32, %v2962_v41  ;;  %4897 = vst [vmem:[#allocation81_spill] sm:$0xff] %v3085_v49  ;;  %233 = vmatprep.subr.mxu0 %v3074_v14  ;;  %v3095_v1 = vsub.f32 %v2941_v33, %v2973_v53  ;;  %v3112_v33 = vld [vmem:[#allocation5 + $0x150] sm:$0xff] }
  0x54   :  { %v746_v2 = vsub.f32 %v3032_v21, %v4894_v52  ;;  %730 = vmatprep.subr.mxu1 %v729_v44  ;;  %v3087_v52 = vld [vmem:[#allocation5 + $0x158] sm:$0xff]  ;;  %v752_v44 = vsub.f32 %v3052_v46, %v4898_v51  ;;  %v3098_v32 = vand.u32 4294901760, %v3067_v12  ;;  %v758_v41 = vsub.f32 %v3065_v47, %v4579_v7  ;;  %235 = vmatpush2.msra.mxu0 %v3085_v49 }
  0x55   :  { %4896 = vst [vmem:[#allocation80_spill] sm:$0xff] %v3082_v28  ;;  %736 = vmatpush2.msra.mxu1 %v735_v39  ;;  %4899 = vst [vmem:[#allocation82_spill] sm:$0xff] %v3095_v1  ;;  %v3107_v51 = vsub.f32 %v2954_v19, %v2986_v36  ;;  %v3118_v7 = vsub.f32 %v2964_v30, %v2998_v26  ;;  %v3121_v39 = vand.u32 4294901760, %v3087_v52  ;;  %v3123_v19 = vld [vmem:[#allocation5 + $0x148] sm:$0xff]  ;;  %v4905_v47 = vand.u32 4294901760, %v3082_v28 }
  0x56   :  { %v747_v20 = vand.u32 4294901760, %v746_v2  ;;  %4900 = vst [vmem:[#allocation83_spill] sm:$0xff] %v3098_v32  ;;  %742 = vmatprep.subr.mxu1 %v741_v13  ;;  %v3110_v2 = vand.u32 4294901760, %v3076_v38  ;;  %v753_v53 = vand.u32 4294901760, %v752_v44  ;;  %v4590_v13 = vand.u32 4294901760, %v3095_v1  ;;  %237 = vmatprep.subr.mxu0 %v3098_v32 }
  0x57   :  { %4901 = vst [vmem:[#allocation84_spill] sm:$0xff] %v3107_v51  ;;  %4903 = vst [vmem:[#allocation86_spill] sm:$0xff] %v3118_v7  ;;  %v759_v36 = vand.u32 4294901760, %v758_v41  ;;  %v764_v46 = vsub.f32 %v3082_v28, %v4905_v47  ;;  %v3132_v44 = vsub.f32 %v2975_v24, %v3009_v56  ;;  %v3140_v41 = vand.u32 4294901760, %v3112_v33 }
  0x58   :  { %4902 = vst [vmem:[#allocation85_spill] sm:$0xff] %v3110_v2  ;;  %748 = vmatpush2.msra.mxu1 %v747_v20  ;;  %4904 = vst [vmem:[#allocation87_spill] sm:$0xff] %v3121_v39  ;;  %239 = vmatpush2.msra.mxu0 %v3110_v2  ;;  %v770_v30 = vsub.f32 %v3095_v1, %v4590_v13  ;;  %v3144_v47 = vsub.f32 %v3000_v37, %v3028_v43  ;;  %v3146_v20 = vld [vmem:[#allocation5 + $0x140] sm:$0xff]  ;;  %v3153_v26 = vand.u32 4294901760, %v3123_v19  ;;  %v3155_v1 = vld [vmem:[#allocation5 + $0x138] sm:$0xff] }
  0x59   :  { %4906 = vst [vmem:[#allocation88_spill] sm:$0xff] %v3132_v44  ;;  %754 = vmatprep.subr.mxu1 %v753_v53  ;;  %241 = vmatprep.subr.mxu0 %v3121_v39  ;;  %4907 = vst [vmem:[#allocation89_spill] sm:$0xff] %v3140_v41  ;;  %v765_v24 = vand.u32 4294901760, %v764_v46  ;;  %v4909_v53 = vand.u32 4294901760, %v3107_v51  ;;  %v4911_v21 = vand.u32 4294901760, %v3118_v7  ;;  %v3164_v46 = vsub.f32 %v3011_v29, %v3041_v61 }
  0x5a   :  { %4908 = vst [vmem:[#allocation90_spill] sm:$0xff] %v3144_v47  ;;  %760 = vmatpush2.msra.mxu1 %v759_v36  ;;  %4910 = vst [vmem:[#allocation91_spill] sm:$0xff] %v3153_v26  ;;  %v771_v28 = vand.u32 4294901760, %v770_v30  ;;  %243 = vmatpush2.msra.mxu0 %v3140_v41  ;;  %v4913_v43 = vand.u32 4294901760, %v3132_v44  ;;  %v3177_v36 = vsub.f32 %v3034_v50, %v3061_v27 }
  0x5b   :  { %v776_v56 = vsub.f32 %v3107_v51, %v4909_v53  ;;  %v782_v37 = vsub.f32 %v3118_v7, %v4911_v21  ;;  %4912 = vst [vmem:[#allocation92_spill] sm:$0xff] %v3164_v46  ;;  %v3166_v53 = vld [vmem:[#allocation5 + $0x130] sm:$0xff]  ;;  %766 = vmatprep.subr.mxu1 %v765_v24  ;;  %245 = vmatprep.subr.mxu0 %v3153_v26  ;;  %v3173_v21 = vand.u32 4294901760, %v3146_v20  ;;  %v3179_v7 = vld [vmem:[#allocation5 + $0x128] sm:$0xff]  ;;  %v4916_v24 = vand.u32 4294901760, %v3144_v47 }
  0x5c   :  { %v788_v30 = vsub.f32 %v3132_v44, %v4913_v43  ;;  %4915 = vst [vmem:[#allocation94_spill] sm:$0xff] %v3177_v36  ;;  %772 = vmatpush2.msra.mxu1 %v771_v28  ;;  %v3186_v43 = vand.u32 4294901760, %v3155_v1  ;;  %v3188_v44 = vld [vmem:[#allocation5 + $0x120] sm:$0xff]  ;;  %v4613_v50 = vand.u32 4294901760, %v3177_v36  ;;  %v3194_v28 = vsub.f32 %v3043_v34, %v3074_v14 }
  0x5d   :  { %v777_v13 = vand.u32 4294901760, %v776_v56  ;;  %4914 = vst [vmem:[#allocation93_spill] sm:$0xff] %v3173_v21  ;;  %v783_v29 = vand.u32 4294901760, %v782_v37  ;;  %v794_v56 = vsub.f32 %v3144_v47, %v4916_v24  ;;  %247 = vmatpush2.msra.mxu0 %v3173_v21  ;;  %v3197_v37 = vand.u32 4294901760, %v3166_v53  ;;  %v3199_v24 = vld [vmem:[#allocation5 + $0x118] sm:$0xff] }
  0x5e   :  { %4917 = vst [vmem:[#allocation95_spill] sm:$0xff] %v3186_v43  ;;  %v789_v51 = vand.u32 4294901760, %v788_v30  ;;  %4918 = vst [vmem:[#allocation96_spill] sm:$0xff] %v3194_v28  ;;  %v4920_v27 = vand.u32 4294901760, %v3164_v46  ;;  %249 = vmatprep.subr.mxu0 %v3186_v43  ;;  %v3207_v30 = vsub.f32 %v3054_v62, %v3085_v49  ;;  %v3210_v34 = vand.u32 4294901760, %v3179_v7  ;;  %v3224_v62 = vld [vmem:[#allocation5 + $0x110] sm:$0xff] }
  0x5f   :  { %778 = vmatprep.subr.mxu1 %v777_v13  ;;  %4919 = vst [vmem:[#allocation97_spill] sm:$0xff] %v3197_v37  ;;  %v795_v61 = vand.u32 4294901760, %v794_v56  ;;  %v806_v14 = vsub.f32 %v3177_v36, %v4613_v50  ;;  %251 = vmatpush2.msra.mxu0 %v3197_v37  ;;  %v3222_v56 = vand.u32 4294901760, %v3188_v44  ;;  %v3230_v50 = vsub.f32 %v3076_v38, %v3110_v2 }
  0x60   :  { %784 = vmatpush2.msra.mxu1 %v783_v29  ;;  %v800_v13 = vsub.f32 %v3164_v46, %v4920_v27  ;;  %4921 = vst [vmem:[#allocation98_spill] sm:$0xff] %v3207_v30  ;;  %4922 = vst [vmem:[#allocation99_spill] sm:$0xff] %v3210_v34  ;;  %v3219_v27 = vsub.f32 %v3067_v12, %v3098_v32  ;;  %253 = vmatprep.subr.mxu0 %v3210_v34  ;;  %v3233_v29 = vand.u32 4294901760, %v3199_v24  ;;  %v3235_v12 = vld [vmem:[#allocation5 + $0x108] sm:$0xff] }
  0x61   :  { %790 = vmatprep.subr.mxu1 %v789_v51  ;;  %4924 = vst [vmem:[#allocation101_spill] sm:$0xff] %v3222_v56  ;;  %v4624_v51 = vand.u32 4294901760, %v3207_v30  ;;  %4925 = vst [vmem:[#allocation102_spill] sm:$0xff] %v3230_v50  ;;  %v807_v32 = vand.u32 4294901760, %v806_v14  ;;  %v4927_v36 = vand.u32 4294901760, %v3194_v28  ;;  %255 = vmatpush2.msra.mxu0 %v3222_v56  ;;  %v3252_v14 = vand.u32 4294901760, %v3224_v62 }
  0x62   :  { %4923 = vst [vmem:[#allocation100_spill] sm:$0xff] %v3219_v27  ;;  %796 = vmatpush2.msra.mxu1 %v795_v61  ;;  %v801_v49 = vand.u32 4294901760, %v800_v13  ;;  %4926 = vst [vmem:[#allocation103_spill] sm:$0xff] %v3233_v29  ;;  %v3244_v13 = vsub.f32 %v3087_v52, %v3121_v39  ;;  %257 = vmatprep.subr.mxu0 %v3233_v29  ;;  %v3258_v61 = vld [vmem:[#allocation5 + $0x100] sm:$0xff]  ;;  %v41_v52 = vld [vmem:[#allocation2 + $0x8] sm:$0xff]  ;;  %v4930_v39 = vand.u32 4294901760, %v3219_v27 }
  0x63   :  { %v812_v46 = vsub.f32 %v3194_v28, %v4927_v36  ;;  %v818_v38 = vsub.f32 %v3207_v30, %v4624_v51  ;;  %4929 = vst [vmem:[#allocation105_spill] sm:$0xff] %v3252_v14  ;;  %v3256_v36 = vsub.f32 %v3112_v33, %v3140_v41  ;;  %v3265_v30 = vand.u32 4294901760, %v3235_v12  ;;  %259 = vmatpush2.msra.mxu0 %v3252_v14 }
  0x64   :  { %4928 = vst [vmem:[#allocation104_spill] sm:$0xff] %v3244_v13  ;;  %802 = vmatprep.subr.mxu1 %v801_v49  ;;  %v824_v51 = vsub.f32 %v3219_v27, %v4930_v39  ;;  %v4637_v2 = vand.u32 4294901760, %v3244_v13  ;;  %v4932_v47 = vand.u32 4294901760, %v3230_v50 }
  0x65   :  { %808 = vmatpush2.msra.mxu1 %v807_v32  ;;  %v813_v49 = vand.u32 4294901760, %v812_v46  ;;  %4931 = vst [vmem:[#allocation106_spill] sm:$0xff] %v3265_v30  ;;  %v819_v28 = vand.u32 4294901760, %v818_v38  ;;  %v3274_v32 = vsub.f32 %v3123_v19, %v3153_v26  ;;  %v40_v46 = vld [vmem:[#allocation2] sm:$0xff]  ;;  %261 = vmatprep.subr.mxu0 %v3265_v30  ;;  %v3281_v38 = vand.u32 4294901760, %v3258_v61 }
  0x66   :  { %v830_v33 = vsub.f32 %v3230_v50, %v4932_v47  ;;  %v825_v39 = vand.u32 4294901760, %v824_v51  ;;  %v836_v27 = vsub.f32 %v3244_v13, %v4637_v2  ;;  %v3283_v47 = vand.u32 4294901760, %v41_v52 }
  0x67   :  { %814 = vmatprep.subr.mxu1 %v813_v49  ;;  %4933 = vst [vmem:[#allocation107_spill] sm:$0xff] %v3281_v38  ;;  %v4935_v50 = vand.u32 4294901760, %v3256_v36  ;;  %v4642_v49 = vand.u32 4294901760, %v3274_v32  ;;  %v3291_v51 = vsub.f32 %v3146_v20, %v3173_v21  ;;  %263 = vmatpush2.msra.mxu0 %v3281_v38  ;;  %v3297_v13 = vand.u32 4294901760, %v40_v46 }
  0x68   :  { %4934 = vst [vmem:[#allocation108_spill] sm:$0xff] %v3283_v47  ;;  %820 = vmatpush2.msra.mxu1 %v819_v28  ;;  %v831_v41 = vand.u32 4294901760, %v830_v33  ;;  %v837_v2 = vand.u32 4294901760, %v836_v27  ;;  %v3295_v26 = vsub.f32 %v41_v52, %v3283_v47  ;;  %v3301_v28 = vsub.f32 %v3155_v1, %v3186_v43  ;;  %1036 = vmatprep.subr.mxu0 %v2523_v18 }
  0x69   :  { %v842_v19 = vsub.f32 %v3256_v36, %v4935_v50  ;;  %826 = vmatprep.subr.mxu1 %v825_v39  ;;  %4937 = vst [vmem:[#allocation110_spill] sm:$0xff] %v3297_v13  ;;  %v43_v50 = vld [vmem:[#allocation2 + $0x18] sm:$0xff]  ;;  %v848_v20 = vsub.f32 %v3274_v32, %v4642_v49  ;;  %v4649_v27 = vand.u32 4294901760, %v3291_v51  ;;  %v3310_v52 = vsub.f32 %v3166_v53, %v3197_v37 }
  0x6a   :  { %4936 = vst [vmem:[#allocation109_spill] sm:$0xff] %v3295_v26  ;;  %832 = vmatpush2.msra.mxu1 %v831_v41  ;;  %v3314_v1 = vsub.f32 %v40_v46, %v3297_v13  ;;  %906 = vmatprep.mubr.f32.mxu1 %v3283_v47  ;;  %v3326_v39 = vand.u32 4294901760, %v43_v50  ;;  %v4939_v46 = vand.u32 4294901760, %v3295_v26 }
  0x6b   :  { %v843_v33 = vand.u32 4294901760, %v842_v19  ;;  %838 = vmatprep.subr.mxu1 %v837_v2  ;;  %v3319_v19 = vsub.f32 %v3179_v7, %v3210_v34  ;;  %v849_v49 = vand.u32 4294901760, %v848_v20  ;;  %v854_v53 = vsub.f32 %v3291_v51, %v4649_v27  ;;  %v42_v20 = vld [vmem:[#allocation2 + $0x10] sm:$0xff] }
  0x6c   :  { %v4655_v2 = vand.u32 4294901760, %v3310_v52  ;;  %4938 = vst [vmem:[#allocation111_spill] sm:$0xff] %v3326_v39  ;;  %v267_v41 = vsub.f32 %v3295_v26, %v4939_v46  ;;  %v4940_v7 = vand.u32 4294901760, %v3301_v28  ;;  %v3340_v18 = vsub.f32 %v43_v50, %v3326_v39 }
  0x6d   :  { %844 = vmatpush2.msra.mxu1 %v843_v33  ;;  %v855_v34 = vand.u32 4294901760, %v854_v53  ;;  %v3344_v46 = vsub.f32 %v3188_v44, %v3222_v56  ;;  %v4942_v43 = vand.u32 4294901760, %v3314_v1  ;;  %v3354_v26 = vand.u32 4294901760, %v42_v20  ;;  %v45_v44 = vld [vmem:[#allocation2 + $0x28] sm:$0xff] }
  0x6e   :  { %v860_v47 = vsub.f32 %v3301_v28, %v4940_v7  ;;  %850 = vmatprep.subr.mxu1 %v849_v49  ;;  %v866_v27 = vsub.f32 %v3310_v52, %v4655_v2  ;;  %4941 = vst [vmem:[#allocation112_spill] sm:$0xff] %v3340_v18  ;;  %v268_v37 = vand.u32 4294901760, %v267_v41  ;;  %v4943_v49 = vand.u32 4294901760, %v3319_v19 }
  0x6f   :  { %v273_v7 = vsub.f32 %v3314_v1, %v4942_v43  ;;  %856 = vmatpush2.msra.mxu1 %v855_v34  ;;  %v4661_v2 = vand.u32 4294901760, %v3340_v18  ;;  %v4660_v50 = vand.u32 4294901760, %v3344_v46  ;;  %4944 = vst [vmem:[#allocation113_spill] sm:$0xff] %v3354_v26  ;;  %v3358_v43 = vsub.f32 %v3199_v24, %v3233_v29  ;;  %v48_v29 = vld [vmem:[#allocation2 + $0x40] sm:$0xff] }
  0x70   :  { %v861_v33 = vand.u32 4294901760, %v860_v47  ;;  %v872_v53 = vsub.f32 %v3319_v19, %v4943_v49  ;;  %v867_v21 = vand.u32 4294901760, %v866_v27  ;;  %269 = vmatprep.mubr.f32.mxu0 %v268_v37  ;;  %v3362_v47 = vsub.f32 %v3224_v62, %v3252_v14  ;;  %v44_v49 = vld [vmem:[#allocation2 + $0x20] sm:$0xff]  ;;  %v49_v14 = vld [vmem:[#allocation2 + $0x48] sm:$0xff] }
  0x71   :  { %v274_v41 = vand.u32 4294901760, %v273_v7  ;;  %v283_v34 = vsub.f32 %v3340_v18, %v4661_v2  ;;  %v878_v37 = vsub.f32 %v3344_v46, %v4660_v50  ;;  %v3371_v27 = vsub.f32 %v42_v20, %v3354_v26 }
  0x72   :  { %862 = vmatprep.subr.mxu1 %v861_v33  ;;  %v873_v56 = vand.u32 4294901760, %v872_v53  ;;  %4945 = vst [vmem:[#allocation114_spill] sm:$0xff] %v3362_v47  ;;  %v3375_v24 = vsub.f32 %v3235_v12, %v3265_v30  ;;  %v4664_v62 = vand.u32 4294901760, %v3358_v43  ;;  %v3379_v33 = vand.u32 4294901760, %v45_v44  ;;  %v47_v53 = vld [vmem:[#allocation2 + $0x38] sm:$0xff] }
  0x73   :  { %868 = vmatpush2.msra.mxu1 %v867_v21  ;;  %4946 = vst [vmem:[#allocation115_spill] sm:$0xff] %v3371_v27  ;;  %275 = vmatmul.mubr.f32.vlgmr.msra.gmra.mxu0 %v274_v41  ;;  %v4667_v21 = vand.u32 4294901760, %v3362_v47  ;;  %v3383_v7 = vsub.f32 %v3258_v61, %v3281_v38  ;;  %v284_v20 = vand.u32 4294901760, %v283_v34  ;;  %v879_v50 = vand.u32 4294901760, %v878_v37 }
  0x74   :  { %4947 = vst [vmem:[#allocation116_spill] sm:$0xff] %v3375_v24  ;;  %874 = vmatprep.subr.mxu1 %v873_v56  ;;  %4948 = vst [vmem:[#allocation117_spill] sm:$0xff] %v3379_v33  ;;  %1039 = vmatpush1.msra.mxu0 %v2536_v23  ;;  %v4670_v12 = vand.u32 4294901760, %v3371_v27  ;;  %v4677_v56 = vand.u32 4294901760, %v3375_v24  ;;  %v884_v41 = vsub.f32 %v3358_v43, %v4664_v62  ;;  %v3405_v62 = vand.u32 4294901760, %v44_v49 }
  0x75   :  { %4949 = vst [vmem:[#allocation118_spill] sm:$0xff] %v3383_v7  ;;  %1042 = vmatprep.subr.mxu0 %v2542_v25  ;;  %v890_v61 = vsub.f32 %v3362_v47, %v4667_v21  ;;  %v3396_v2 = vsub.f32 %v45_v44, %v3379_v33  ;;  %285 = vmatprep.mubr.f32.mxu0 %v284_v20  ;;  %v3407_v30 = vand.u32 4294901760, %v47_v53  ;;  %v46_v21 = vld [vmem:[#allocation2 + $0x30] sm:$0xff]  ;;  %v4953_v20 = vand.u32 4294901760, %v3383_v7 }
  0x76   :  { %880 = vmatpush2.msra.mxu1 %v879_v50  ;;  %v289_v37 = vsub.f32 %v3371_v27, %v4670_v12  ;;  %v896_v38 = vsub.f32 %v3375_v24, %v4677_v56  ;;  %4951 = vst [vmem:[#allocation120_spill] sm:$0xff] %v3405_v62  ;;  %1045 = vmatpush1.msra.mxu0 %v2556_v31  ;;  %v885_v44 = vand.u32 4294901760, %v884_v41  ;;  %v51_v27 = vld [vmem:[#allocation2 + $0x58] sm:$0xff]  ;;  %v50_v41 = vld [vmem:[#allocation2 + $0x50] sm:$0xff]  ;;  %v3425_v31 = vand.u32 4294901760, %v46_v21 }
  0x77   :  { %4950 = vst [vmem:[#allocation119_spill] sm:$0xff] %v3396_v2  ;;  %4952 = vst [vmem:[#allocation121_spill] sm:$0xff] %v3407_v30  ;;  %v891_v34 = vand.u32 4294901760, %v890_v61  ;;  %v4682_v50 = vand.u32 4294901760, %v3396_v2  ;;  %v902_v12 = vsub.f32 %v3383_v7, %v4953_v20  ;;  %1048 = vmatprep.subr.mxu0 %v2565_v35  ;;  %v3416_v25 = vsub.f32 %v44_v49, %v3405_v62 }
  0x78   :  { %v290_v18 = vand.u32 4294901760, %v289_v37  ;;  %v897_v56 = vand.u32 4294901760, %v896_v38  ;;  %v3419_v23 = vsub.f32 %v47_v53, %v3407_v30  ;;  %886 = vmatprep.subr.mxu1 %v885_v44  ;;  %1051 = vmatpush1.msra.mxu0 %v2578_v40  ;;  %4955 = vst [vmem:[#allocation123_spill] sm:$0xff] %v3425_v31  ;;  %v3427_v37 = vand.u32 4294901760, %v49_v14 }
  0x79   :  { %v299_v61 = vsub.f32 %v3396_v2, %v4682_v50  ;;  %v903_v20 = vand.u32 4294901760, %v902_v12  ;;  %892 = vmatpush2.msra.mxu1 %v891_v34  ;;  %v4687_v38 = vand.u32 4294901760, %v3416_v25  ;;  %v3431_v53 = vand.u32 4294901760, %v48_v29  ;;  %1054 = vmatprep.subr.mxu0 %v2592_v45 }
  0x7a   :  { %4954 = vst [vmem:[#allocation122_spill] sm:$0xff] %v3419_v23  ;;  %4956 = vst [vmem:[#allocation124_spill] sm:$0xff] %v3427_v37  ;;  %291 = vmatmul.mubr.f32.gmra.mxu0 %v290_v18  ;;  %v4686_v49 = vand.u32 4294901760, %v3419_v23  ;;  %v3433_v44 = vand.u32 4294901760, %v51_v27  ;;  %898 = vmatprep.subr.mxu1 %v897_v56  ;;  %v3437_v12 = vsub.f32 %v46_v21, %v3425_v31  ;;  %v3442_v18 = vand.u32 4294901760, %v50_v41  ;;  %v53_v21 = vld [vmem:[#allocation2 + $0x68] sm:$0xff] }
  0x7b   :  { %4957 = vst [vmem:[#allocation125_spill] sm:$0xff] %v3431_v53  ;;  %v300_v40 = vand.u32 4294901760, %v299_v61  ;;  %v3440_v50 = vsub.f32 %v49_v14, %v3427_v37  ;;  %904 = vmatpush2.msra.mxu1 %v903_v20  ;;  %1057 = vmatpush1.msra.mxu0 %v2618_v59  ;;  %v305_v34 = vsub.f32 %v3416_v25, %v4687_v38  ;;  %v52_v38 = vld [vmem:[#allocation2 + $0x60] sm:$0xff] }
  0x7c   :  { %4958 = vst [vmem:[#allocation126_spill] sm:$0xff] %v3433_v44  ;;  %4959 = vst [vmem:[#allocation127_spill] sm:$0xff] %v3437_v12  ;;  %v315_v56 = vsub.f32 %v3419_v23, %v4686_v49  ;;  %v3452_v61 = vsub.f32 %v48_v29, %v3431_v53  ;;  %908 = vmatmul.mubr.f32.vlgmr.msra.gmra.mxu1 %v3297_v13  ;;  %v4690_v14 = vand.u32 4294901760, %v3437_v12  ;;  %1060 = vmatprep.subr.mxu0 %v2630_v0 }
  0x7d   :  { %4960 = vst [vmem:[#allocation128_spill] sm:$0xff] %v3442_v18  ;;  %301 = vmatprep.mubr.f32.mxu0 %v300_v40  ;;  %v4696_v20 = vand.u32 4294901760, %v3440_v50  ;;  %v3458_v59 = vsub.f32 %v51_v27, %v3433_v44  ;;  %v306_v2 = vand.u32 4294901760, %v305_v34  ;;  %1388 = vmatprep.subr.mxu1 %v2503_v3  ;;  %v3472_v34 = vsub.f32 %v50_v41, %v3442_v18  ;;  %v55_v41 = vld [vmem:[#allocation2 + $0x78] sm:$0xff] }
  0x7e   :  { %v316_v49 = vand.u32 4294901760, %v315_v56  ;;  %v4695_v29 = vand.u32 4294901760, %v3452_v61  ;;  %1063 = vmatpush1.msra.mxu0 %v2641_v8  ;;  %1390 = vmatpush1.msra.mxu1 %v2505_v4  ;;  %v321_v40 = vsub.f32 %v3437_v12, %v4690_v14  ;;  %v3474_v13 = vand.u32 4294901760, %v53_v21 }
  0x7f   :  { %4961 = vst [vmem:[#allocation129_spill] sm:$0xff] %v3458_v59  ;;  %v331_v27 = vsub.f32 %v3440_v50, %v4696_v20  ;;  %4962 = vst [vmem:[#allocation130_spill] sm:$0xff] %v3472_v34  ;;  %307 = vmatmul.mubr.f32.gmra.mxu0 %v306_v2  ;;  %1066 = vmatprep.subr.mxu0 %v2652_v42  ;;  %v4701_v12 = vand.u32 4294901760, %v3458_v59  ;;  %v3482_v23 = vand.u32 4294901760, %v52_v38 }
  0x80   :  { %4963 = vst [vmem:[#allocation131_spill] sm:$0xff] %v3474_v13  ;;  %1392 = vmatprep.subr.mxu1 %v2507_v5  ;;  %317 = vmatprep.mubr.f32.mxu0 %v316_v49  ;;  %v322_v56 = vand.u32 4294901760, %v321_v40  ;;  %v337_v14 = vsub.f32 %v3452_v61, %v4695_v29  ;;  %v3490_v40 = vsub.f32 %v53_v21, %v3474_v13  ;;  %v54_v29 = vld [vmem:[#allocation2 + $0x70] sm:$0xff]  ;;  %v3501_v49 = vand.u32 4294901760, %v55_v41 }
  0x81   :  { %4964 = vst [vmem:[#allocation132_spill] sm:$0xff] %v3482_v23  ;;  %914 = vmatprep.mubr.f32.mxu1 %v3326_v39  ;;  %1069 = vmatpush1.msra.mxu0 %v2664_v48  ;;  %v332_v2 = vand.u32 4294901760, %v331_v27  ;;  %v347_v39 = vsub.f32 %v3458_v59, %v4701_v12  ;;  %v3499_v27 = vsub.f32 %v52_v38, %v3482_v23  ;;  %v4968_v21 = vand.u32 4294901760, %v3472_v34  ;;  %v57_v38 = vld [vmem:[#allocation2 + $0x88] sm:$0xff] }
  0x82   :  { %1394 = vmatpush1.msra.mxu1 %v2509_v9  ;;  %1072 = vmatprep.subr.mxu0 %v2678_v57  ;;  %4965 = vst [vmem:[#allocation133_spill] sm:$0xff] %v3490_v40  ;;  %v338_v20 = vand.u32 4294901760, %v337_v14  ;;  %4967 = vst [vmem:[#allocation135_spill] sm:$0xff] %v3501_v49  ;;  %v3529_v59 = vand.u32 4294901760, %v57_v38 }
  0x83   :  { %323 = vmatmul.mubr.f32.gmra.mxu0 %v322_v56  ;;  %916 = vmatmul.mubr.f32.gmra.mxu1 %v3354_v26  ;;  %4966 = vst [vmem:[#allocation134_spill] sm:$0xff] %v3499_v27  ;;  %v353_v14 = vsub.f32 %v3472_v34, %v4968_v21  ;;  %v3510_v26 = vand.u32 4294901760, %v54_v29  ;;  %v348_v12 = vand.u32 4294901760, %v347_v39  ;;  %v56_v21 = vld [vmem:[#allocation2 + $0x80] sm:$0xff]  ;;  %v58_v34 = vld [vmem:[#allocation2 + $0x90] sm:$0xff] }
  0x84   :  { %1396 = vmatprep.subr.mxu1 %v2511_v10  ;;  %1075 = vmatpush1.msra.mxu0 %v2690_v6  ;;  %4973 = vst [vmem:[#allocation139_spill] sm:$0xff] %v3529_v59 }
  0x85   :  { %1398 = vmatpush1.msra.mxu1 %v2513_v11  ;;  %1078 = vmatprep.subr.mxu0 %v2711_v54  ;;  %4969 = vst [vmem:[#allocation136_spill] sm:$0xff] %v3510_v26  ;;  %v354_v56 = vand.u32 4294901760, %v353_v14  ;;  %v3527_v39 = vsub.f32 %v54_v29, %v3510_v26  ;;  %v59_v29 = vld [vmem:[#allocation2 + $0x98] sm:$0xff] }
  0x86   :  { %1400 = vmatprep.subr.mxu1 %v2516_v15  ;;  %333 = vmatprep.mubr.f32.mxu0 %v332_v2  ;;  %v3517_v2 = vsub.f32 %v55_v41, %v3501_v49  ;;  %v4974_v41 = vld [vmem:[#allocation14_spill] sm:$0xff] }
  0x87   :  { %922 = vmatprep.mubr.f32.mxu1 %v3379_v33  ;;  %1081 = vmatpush1.msra.mxu0 %v2724_v63  ;;  %v4971_v33 = vand.u32 4294901760, %v3490_v40  ;;  %4972 = vst [vmem:[#allocation138_spill] sm:$0xff] %v3527_v39 }
  0x88   :  { %1402 = vmatpush1.msra.mxu1 %v2518_v16  ;;  %339 = vmatmul.mubr.f32.gmra.mxu0 %v338_v20  ;;  %4970 = vst [vmem:[#allocation137_spill] sm:$0xff] %v3517_v2 }
  0x89   :  { %924 = vmatmul.mubr.f32.gmra.mxu1 %v3405_v62  ;;  %1084 = vmatprep.subr.mxu0 %v2742_v55  ;;  %v363_v20 = vsub.f32 %v3490_v40, %v4971_v33  ;;  %v4975_v62 = vand.u32 4294901760, %v3499_v27  ;;  %v4977_v33 = vld [vmem:[#allocation38_spill] sm:$0xff]  ;;  %v4978_v40 = vld [vmem:[#allocation16_spill] sm:$0xff] }
  0x8a   :  { %1404 = vmatprep.subr.mxu1 %v2520_v17  ;;  %1087 = vmatpush1.msra.mxu0 %v2755_v58  ;;  %v3538_v58 = vand.u32 4294901760, %v56_v21 }
  0x8b   :  { %1406 = vmatpush1.msra.mxu1 %v2533_v22  ;;  %1090 = vmatprep.subr.mxu0 %v2767_v60  ;;  %v369_v14 = vsub.f32 %v3499_v27, %v4975_v62  ;;  %v364_v60 = vand.u32 4294901760, %v363_v20  ;;  %v4980_v62 = vld [vmem:[#allocation40_spill] sm:$0xff]  ;;  %v4981_v27 = vld [vmem:[#allocation18_spill] sm:$0xff]  ;;  %v4983_v22 = vand.u32 4294901760, %v3517_v2 }
  0x8c   :  { %1408 = vmatprep.subr.mxu1 %v4974_v41  ;;  %349 = vmatprep.mubr.f32.mxu0 %v348_v12  ;;  %4976 = vst [vmem:[#allocation140_spill] sm:$0xff] %v3538_v58  ;;  %v3545_v12 = vsub.f32 %v57_v38, %v3529_v59  ;;  %v3555_v20 = vsub.f32 %v56_v21, %v3538_v58  ;;  %v3557_v41 = vand.u32 4294901760, %v59_v29  ;;  %v4986_v38 = vld [vmem:[#allocation19_spill] sm:$0xff]  ;;  %v61_v21 = vld [vmem:[#allocation2 + $0xa8] sm:$0xff] }
  0x8d   :  { %930 = vmatprep.mubr.f32.mxu1 %v3407_v30  ;;  %1093 = vmatpush1.msra.mxu0 %v4977_v33  ;;  %v4982_v30 = vld [vmem:[#allocation42_spill] sm:$0xff]  ;;  %v370_v33 = vand.u32 4294901760, %v369_v14 }
  0x8e   :  { %1410 = vmatpush1.msra.mxu1 %v4978_v40  ;;  %355 = vmatmul.mubr.f32.gmra.mxu0 %v354_v56  ;;  %4979 = vst [vmem:[#allocation141_spill] sm:$0xff] %v3545_v12  ;;  %v379_v56 = vsub.f32 %v3517_v2, %v4983_v22  ;;  %4984 = vst [vmem:[#allocation142_spill] sm:$0xff] %v3555_v20  ;;  %v3566_v40 = vand.u32 4294901760, %v58_v34  ;;  %v4991_v22 = vld [vmem:[#allocation46_spill] sm:$0xff] }
  0x8f   :  { %932 = vmatmul.mubr.f32.gmra.mxu1 %v3425_v31  ;;  %1096 = vmatprep.subr.mxu0 %v4980_v62  ;;  %4985 = vst [vmem:[#allocation143_spill] sm:$0xff] %v3557_v41  ;;  %v4987_v31 = vld [vmem:[#allocation44_spill] sm:$0xff]  ;;  %v4988_v62 = vld [vmem:[#allocation21_spill] sm:$0xff]  ;;  %v4992_v2 = vld [vmem:[#allocation22_spill] sm:$0xff] }
  0x90   :  { %1412 = vmatprep.subr.mxu1 %v4981_v27  ;;  %1099 = vmatpush1.msra.mxu0 %v4982_v30  ;;  %v4989_v27 = vand.u32 4294901760, %v3527_v39  ;;  %4990 = vst [vmem:[#allocation144_spill] sm:$0xff] %v3566_v40  ;;  %v60_v30 = vld [vmem:[#allocation2 + $0xa0] sm:$0xff] }
  0x91   :  { %1414 = vmatpush1.msra.mxu1 %v4986_v38  ;;  %1102 = vmatprep.subr.mxu0 %v4987_v31  ;;  %v380_v31 = vand.u32 4294901760, %v379_v56  ;;  %v4997_v38 = vand.u32 4294901760, %v3545_v12  ;;  %v3583_v56 = vsub.f32 %v58_v34, %v3566_v40  ;;  %v5005_v34 = vld [vmem:[#allocation54_spill] sm:$0xff] }
  0x92   :  { %1416 = vmatprep.subr.mxu1 %v4988_v62  ;;  %365 = vmatprep.mubr.f32.mxu0 %v364_v60  ;;  %v385_v14 = vsub.f32 %v3527_v39, %v4989_v27  ;;  %v3573_v60 = vsub.f32 %v59_v29, %v3557_v41  ;;  %v4994_v27 = vld [vmem:[#allocation48_spill] sm:$0xff]  ;;  %v3585_v62 = vand.u32 4294901760, %v61_v21  ;;  %v5000_v29 = vld [vmem:[#allocation25_spill] sm:$0xff] }
  0x93   :  { %938 = vmatprep.mubr.f32.mxu1 %v3427_v37  ;;  %1105 = vmatpush1.msra.mxu0 %v4991_v22  ;;  %v4995_v39 = vld [vmem:[#allocation24_spill] sm:$0xff]  ;;  %v4996_v37 = vld [vmem:[#allocation50_spill] sm:$0xff]  ;;  %4998 = vst [vmem:[#allocation146_spill] sm:$0xff] %v3583_v56 }
  0x94   :  { %1418 = vmatpush1.msra.mxu1 %v4992_v2  ;;  %371 = vmatmul.mubr.f32.gmra.mxu0 %v370_v33  ;;  %4993 = vst [vmem:[#allocation145_spill] sm:$0xff] %v3573_v60  ;;  %v386_v22 = vand.u32 4294901760, %v385_v14  ;;  %v395_v33 = vsub.f32 %v3545_v12, %v4997_v38  ;;  %4999 = vst [vmem:[#allocation147_spill] sm:$0xff] %v3585_v62  ;;  %v3594_v2 = vand.u32 4294901760, %v60_v30  ;;  %v63_v38 = vld [vmem:[#allocation2 + $0xb8] sm:$0xff]  ;;  %v5006_v12 = vld [vmem:[#allocation27_spill] sm:$0xff] }
  0x95   :  { %940 = vmatmul.mubr.f32.gmra.mxu1 %v3431_v53  ;;  %1108 = vmatprep.subr.mxu0 %v4994_v27  ;;  %v5001_v53 = vld [vmem:[#allocation52_spill] sm:$0xff]  ;;  %v5002_v27 = vld [vmem:[#allocation26_spill] sm:$0xff] }
  0x96   :  { %1420 = vmatprep.subr.mxu1 %v4995_v39  ;;  %1111 = vmatpush1.msra.mxu0 %v4996_v37  ;;  %v5003_v39 = vand.u32 4294901760, %v3555_v20  ;;  %5004 = vst [vmem:[#allocation148_spill] sm:$0xff] %v3594_v2  ;;  %v62_v37 = vld [vmem:[#allocation2 + $0xb0] sm:$0xff] }
  0x97   :  { %1422 = vmatpush1.msra.mxu1 %v5000_v29  ;;  %1114 = vmatprep.subr.mxu0 %v5001_v53  ;;  %v396_v53 = vand.u32 4294901760, %v395_v33  ;;  %v5011_v29 = vand.u32 4294901760, %v3573_v60  ;;  %v3611_v33 = vsub.f32 %v60_v30, %v3594_v2  ;;  %v5019_v30 = vld [vmem:[#allocation62_spill] sm:$0xff] }
  0x98   :  { %1424 = vmatprep.subr.mxu1 %v5002_v27  ;;  %381 = vmatprep.mubr.f32.mxu0 %v380_v31  ;;  %v401_v14 = vsub.f32 %v3555_v20, %v5003_v39  ;;  %v3601_v31 = vsub.f32 %v61_v21, %v3585_v62  ;;  %v5008_v39 = vld [vmem:[#allocation56_spill] sm:$0xff]  ;;  %v3613_v27 = vand.u32 4294901760, %v63_v38  ;;  %v5014_v21 = vld [vmem:[#allocation29_spill] sm:$0xff] }
  0x99   :  { %946 = vmatprep.mubr.f32.mxu1 %v3433_v44  ;;  %1117 = vmatpush1.msra.mxu0 %v5005_v34  ;;  %v5009_v20 = vld [vmem:[#allocation28_spill] sm:$0xff]  ;;  %v5010_v44 = vld [vmem:[#allocation58_spill] sm:$0xff]  ;;  %5012 = vst [vmem:[#allocation150_spill] sm:$0xff] %v3611_v33 }
  0x9a   :  { %1426 = vmatpush1.msra.mxu1 %v5006_v12  ;;  %387 = vmatmul.mubr.f32.gmra.mxu0 %v386_v22  ;;  %5007 = vst [vmem:[#allocation149_spill] sm:$0xff] %v3601_v31  ;;  %v402_v34 = vand.u32 4294901760, %v401_v14  ;;  %v411_v22 = vsub.f32 %v3573_v60, %v5011_v29  ;;  %5013 = vst [vmem:[#allocation151_spill] sm:$0xff] %v3613_v27  ;;  %v3622_v12 = vand.u32 4294901760, %v62_v37  ;;  %v65_v29 = vld [vmem:[#allocation2 + $0xc8] sm:$0xff]  ;;  %v5020_v60 = vld [vmem:[#allocation31_spill] sm:$0xff] }
  0x9b   :  { %948 = vmatmul.mubr.f32.gmra.mxu1 %v3442_v18  ;;  %1120 = vmatprep.subr.mxu0 %v5008_v39  ;;  %v5015_v18 = vld [vmem:[#allocation60_spill] sm:$0xff]  ;;  %v5016_v39 = vld [vmem:[#allocation30_spill] sm:$0xff] }
  0x9c   :  { %1428 = vmatprep.subr.mxu1 %v5009_v20  ;;  %1123 = vmatpush1.msra.mxu0 %v5010_v44  ;;  %v5017_v20 = vand.u32 4294901760, %v3583_v56  ;;  %5018 = vst [vmem:[#allocation152_spill] sm:$0xff] %v3622_v12  ;;  %v64_v44 = vld [vmem:[#allocation2 + $0xc0] sm:$0xff] }
  0x9d   :  { %1430 = vmatpush1.msra.mxu1 %v5014_v21  ;;  %1126 = vmatprep.subr.mxu0 %v5015_v18  ;;  %v412_v18 = vand.u32 4294901760, %v411_v22  ;;  %v5025_v21 = vand.u32 4294901760, %v3601_v31  ;;  %v3639_v22 = vsub.f32 %v62_v37, %v3622_v12  ;;  %v5033_v37 = vld [vmem:[#allocation70_spill] sm:$0xff] }
  0x9e   :  { %1432 = vmatprep.subr.mxu1 %v5016_v39  ;;  %397 = vmatprep.mubr.f32.mxu0 %v396_v53  ;;  %v417_v14 = vsub.f32 %v3583_v56, %v5017_v20  ;;  %v3629_v53 = vsub.f32 %v63_v38, %v3613_v27  ;;  %v5022_v20 = vld [vmem:[#allocation64_spill] sm:$0xff]  ;;  %v3641_v39 = vand.u32 4294901760, %v65_v29  ;;  %v5028_v38 = vld [vmem:[#allocation33_spill] sm:$0xff] }
  0x9f   :  { %954 = vmatprep.mubr.f32.mxu1 %v3474_v13  ;;  %1129 = vmatpush1.msra.mxu0 %v5019_v30  ;;  %v5023_v56 = vld [vmem:[#allocation32_spill] sm:$0xff]  ;;  %v5024_v13 = vld [vmem:[#allocation66_spill] sm:$0xff]  ;;  %5026 = vst [vmem:[#allocation154_spill] sm:$0xff] %v3639_v22 }
  0xa0   :  { %1434 = vmatpush1.msra.mxu1 %v5020_v60  ;;  %403 = vmatmul.mubr.f32.gmra.mxu0 %v402_v34  ;;  %5021 = vst [vmem:[#allocation153_spill] sm:$0xff] %v3629_v53  ;;  %v418_v30 = vand.u32 4294901760, %v417_v14  ;;  %v427_v34 = vsub.f32 %v3601_v31, %v5025_v21  ;;  %5027 = vst [vmem:[#allocation155_spill] sm:$0xff] %v3641_v39  ;;  %v3650_v60 = vand.u32 4294901760, %v64_v44  ;;  %v67_v21 = vld [vmem:[#allocation2 + $0xd8] sm:$0xff]  ;;  %v5034_v31 = vld [vmem:[#allocation37_spill] sm:$0xff] }
  0xa1   :  { %956 = vmatmul.mubr.f32.gmra.mxu1 %v3482_v23  ;;  %1132 = vmatprep.subr.mxu0 %v5022_v20  ;;  %v5029_v23 = vld [vmem:[#allocation68_spill] sm:$0xff]  ;;  %v5030_v20 = vld [vmem:[#allocation35_spill] sm:$0xff] }
  0xa2   :  { %1436 = vmatprep.subr.mxu1 %v5023_v56  ;;  %1135 = vmatpush2.msra.mxu0 %v5024_v13  ;;  %v5031_v56 = vand.u32 4294901760, %v3611_v33  ;;  %5032 = vst [vmem:[#allocation156_spill] sm:$0xff] %v3650_v60  ;;  %v66_v13 = vld [vmem:[#allocation2 + $0xd0] sm:$0xff] }
  0xa3   :  { %1438 = vmatpush1.msra.mxu1 %v5028_v38  ;;  %1138 = vmatprep.subr.mxu0 %v5029_v23  ;;  %v428_v23 = vand.u32 4294901760, %v427_v34  ;;  %v5039_v38 = vand.u32 4294901760, %v3629_v53  ;;  %v3667_v34 = vsub.f32 %v64_v44, %v3650_v60  ;;  %v5047_v44 = vld [vmem:[#allocation78_spill] sm:$0xff] }
  0xa4   :  { %1440 = vmatprep.subr.mxu1 %v5030_v20  ;;  %413 = vmatprep.mubr.f32.mxu0 %v412_v18  ;;  %v433_v14 = vsub.f32 %v3611_v33, %v5031_v56  ;;  %v3657_v18 = vsub.f32 %v65_v29, %v3641_v39  ;;  %v5036_v56 = vld [vmem:[#allocation72_spill] sm:$0xff]  ;;  %v5037_v33 = vld [vmem:[#allocation39_spill] sm:$0xff]  ;;  %v3669_v20 = vand.u32 4294901760, %v67_v21  ;;  %v5042_v29 = vld [vmem:[#allocation41_spill] sm:$0xff] }
  0xa5   :  { %962 = vmatprep.mubr.f32.mxu1 %v3501_v49  ;;  %1141 = vmatpush2.msra.mxu0 %v5033_v37  ;;  %v5038_v49 = vld [vmem:[#allocation74_spill] sm:$0xff]  ;;  %5040 = vst [vmem:[#allocation158_spill] sm:$0xff] %v3667_v34 }
  0xa6   :  { %1442 = vmatpush1.msra.mxu1 %v5034_v31  ;;  %419 = vmatmul.mubr.f32.gmra.mxu0 %v418_v30  ;;  %5035 = vst [vmem:[#allocation157_spill] sm:$0xff] %v3657_v18  ;;  %v434_v37 = vand.u32 4294901760, %v433_v14  ;;  %v443_v30 = vsub.f32 %v3629_v53, %v5039_v38  ;;  %5041 = vst [vmem:[#allocation159_spill] sm:$0xff] %v3669_v20  ;;  %v3678_v31 = vand.u32 4294901760, %v66_v13  ;;  %v69_v38 = vld [vmem:[#allocation2 + $0xe8] sm:$0xff]  ;;  %v5048_v53 = vld [vmem:[#allocation45_spill] sm:$0xff] }
  0xa7   :  { %964 = vmatmul.mubr.f32.gmra.mxu1 %v3510_v26  ;;  %1144 = vmatprep.subr.mxu0 %v5036_v56  ;;  %v5043_v26 = vld [vmem:[#allocation76_spill] sm:$0xff]  ;;  %v5044_v56 = vld [vmem:[#allocation43_spill] sm:$0xff] }
  0xa8   :  { %1444 = vmatprep.subr.mxu1 %v5037_v33  ;;  %1147 = vmatpush2.msra.mxu0 %v5038_v49  ;;  %v5045_v33 = vand.u32 4294901760, %v3639_v22  ;;  %5046 = vst [vmem:[#allocation160_spill] sm:$0xff] %v3678_v31  ;;  %v68_v49 = vld [vmem:[#allocation2 + $0xe0] sm:$0xff] }
  0xa9   :  { %1446 = vmatpush1.msra.mxu1 %v5042_v29  ;;  %1150 = vmatprep.subr.mxu0 %v5043_v26  ;;  %v444_v26 = vand.u32 4294901760, %v443_v30  ;;  %v5053_v29 = vand.u32 4294901760, %v3657_v18  ;;  %v3695_v30 = vsub.f32 %v66_v13, %v3678_v31  ;;  %v5061_v13 = vld [vmem:[#allocation86_spill] sm:$0xff] }
  0xaa   :  { %1448 = vmatprep.subr.mxu1 %v5044_v56  ;;  %429 = vmatprep.mubr.f32.mxu0 %v428_v23  ;;  %v449_v14 = vsub.f32 %v3639_v22, %v5045_v33  ;;  %v3685_v23 = vsub.f32 %v67_v21, %v3669_v20  ;;  %v5050_v33 = vld [vmem:[#allocation80_spill] sm:$0xff]  ;;  %v5051_v22 = vld [vmem:[#allocation47_spill] sm:$0xff]  ;;  %v3697_v56 = vand.u32 4294901760, %v69_v38  ;;  %v5056_v21 = vld [vmem:[#allocation49_spill] sm:$0xff] }
  0xab   :  { %970 = vmatprep.mubr.f32.mxu1 %v3529_v59  ;;  %1153 = vmatpush2.msra.mxu0 %v5047_v44  ;;  %v5052_v59 = vld [vmem:[#allocation82_spill] sm:$0xff]  ;;  %5054 = vst [vmem:[#allocation162_spill] sm:$0xff] %v3695_v30 }
  0xac   :  { %1450 = vmatpush1.msra.mxu1 %v5048_v53  ;;  %435 = vmatmul.mubr.f32.gmra.mxu0 %v434_v37  ;;  %5049 = vst [vmem:[#allocation161_spill] sm:$0xff] %v3685_v23  ;;  %v450_v44 = vand.u32 4294901760, %v449_v14  ;;  %v459_v37 = vsub.f32 %v3657_v18, %v5053_v29  ;;  %5055 = vst [vmem:[#allocation163_spill] sm:$0xff] %v3697_v56  ;;  %v3706_v53 = vand.u32 4294901760, %v68_v49  ;;  %v71_v29 = vld [vmem:[#allocation2 + $0xf8] sm:$0xff]  ;;  %v5062_v18 = vld [vmem:[#allocation53_spill] sm:$0xff] }
  0xad   :  { %972 = vmatmul.mubr.f32.gmra.mxu1 %v3538_v58  ;;  %1156 = vmatprep.subr.mxu0 %v5050_v33  ;;  %v5057_v58 = vld [vmem:[#allocation84_spill] sm:$0xff]  ;;  %v5058_v33 = vld [vmem:[#allocation51_spill] sm:$0xff] }
  0xae   :  { %1452 = vmatprep.subr.mxu1 %v5051_v22  ;;  %1159 = vmatpush2.msra.mxu0 %v5052_v59  ;;  %v5059_v22 = vand.u32 4294901760, %v3667_v34  ;;  %5060 = vst [vmem:[#allocation164_spill] sm:$0xff] %v3706_v53  ;;  %v70_v59 = vld [vmem:[#allocation2 + $0xf0] sm:$0xff] }
  0xaf   :  { %1454 = vmatpush2.msra.mxu1 %v5056_v21  ;;  %1162 = vmatprep.subr.mxu0 %v5057_v58  ;;  %v460_v58 = vand.u32 4294901760, %v459_v37  ;;  %v5067_v21 = vand.u32 4294901760, %v3685_v23  ;;  %v3723_v37 = vsub.f32 %v68_v49, %v3706_v53  ;;  %v5075_v49 = vld [vmem:[#allocation94_spill] sm:$0xff] }
  0xb0   :  { %1456 = vmatprep.subr.mxu1 %v5058_v33  ;;  %445 = vmatprep.mubr.f32.mxu0 %v444_v26  ;;  %v465_v14 = vsub.f32 %v3667_v34, %v5059_v22  ;;  %v3713_v26 = vsub.f32 %v69_v38, %v3697_v56  ;;  %v5064_v22 = vld [vmem:[#allocation88_spill] sm:$0xff]  ;;  %v5065_v34 = vld [vmem:[#allocation55_spill] sm:$0xff]  ;;  %v3725_v33 = vand.u32 4294901760, %v71_v29  ;;  %v5070_v38 = vld [vmem:[#allocation57_spill] sm:$0xff] }
  0xb1   :  { %978 = vmatprep.mubr.f32.mxu1 %v3557_v41  ;;  %1165 = vmatpush2.msra.mxu0 %v5061_v13  ;;  %v5066_v41 = vld [vmem:[#allocation90_spill] sm:$0xff]  ;;  %5068 = vst [vmem:[#allocation166_spill] sm:$0xff] %v3723_v37 }
  0xb2   :  { %1458 = vmatpush2.msra.mxu1 %v5062_v18  ;;  %451 = vmatmul.mubr.f32.gmra.mxu0 %v450_v44  ;;  %5063 = vst [vmem:[#allocation165_spill] sm:$0xff] %v3713_v26  ;;  %v466_v13 = vand.u32 4294901760, %v465_v14  ;;  %v475_v44 = vsub.f32 %v3685_v23, %v5067_v21  ;;  %5069 = vst [vmem:[#allocation167_spill] sm:$0xff] %v3725_v33  ;;  %v3734_v18 = vand.u32 4294901760, %v70_v59  ;;  %v5076_v21 = vld [vmem:[#allocation61_spill] sm:$0xff] }
  0xb3   :  { %980 = vmatmul.mubr.f32.gmra.mxu1 %v3566_v40  ;;  %1168 = vmatprep.subr.mxu0 %v5064_v22  ;;  %v5071_v40 = vld [vmem:[#allocation92_spill] sm:$0xff]  ;;  %v5072_v22 = vld [vmem:[#allocation59_spill] sm:$0xff] }
  0xb4   :  { %1460 = vmatprep.subr.mxu1 %v5065_v34  ;;  %1171 = vmatpush2.msra.mxu0 %v5066_v41  ;;  %v5073_v34 = vand.u32 4294901760, %v3695_v30  ;;  %5074 = vst [vmem:[#allocation57_spill] sm:$0xff] %v3734_v18  ;;  %v476_v23 = vand.u32 4294901760, %v475_v44  ;;  %v5079_v41 = vld [vmem:[#allocation63_spill] sm:$0xff]  ;;  %v5082_v44 = vld [vmem:[#allocation65_spill] sm:$0xff] }
  0xb5   :  { %1462 = vmatpush2.msra.mxu1 %v5070_v38  ;;  %1174 = vmatprep.subr.mxu0 %v5071_v40  ;;  %v5084_v40 = vld [vmem:[#allocation67_spill] sm:$0xff] }
  0xb6   :  { %1464 = vmatprep.subr.mxu1 %v5072_v22  ;;  %461 = vmatprep.mubr.f32.mxu0 %v460_v58  ;;  %v481_v14 = vsub.f32 %v3695_v30, %v5073_v34  ;;  %v3741_v58 = vsub.f32 %v71_v29, %v3725_v33  ;;  %v5078_v34 = vld [vmem:[#allocation96_spill] sm:$0xff]  ;;  %v5080_v30 = vld [vmem:[#allocation98_spill] sm:$0xff] }
  0xb7   :  { %986 = vmatprep.mubr.f32.mxu1 %v3585_v62  ;;  %1177 = vmatpush2.msra.mxu0 %v5075_v49  ;;  %v5081_v49 = vand.u32 4294901760, %v3713_v26  ;;  %v5083_v29 = vld [vmem:[#allocation100_spill] sm:$0xff] }
  0xb8   :  { %1466 = vmatpush2.msra.mxu1 %v5076_v21  ;;  %467 = vmatmul.mubr.f32.gmra.mxu0 %v466_v13  ;;  %5077 = vst [vmem:[#allocation59_spill] sm:$0xff] %v3741_v58  ;;  %v482_v62 = vand.u32 4294901760, %v481_v14  ;;  %v3751_v13 = vsub.f32 %v70_v59, %v3734_v18  ;;  %v4785_v14 = vand.u32 4294901760, %v3741_v58 }
  0xb9   :  { %988 = vmatmul.mubr.f32.gmra.mxu1 %v3594_v2  ;;  %1180 = vmatprep.subr.mxu0 %v5078_v34  ;;  %v491_v21 = vsub.f32 %v3713_v26, %v5081_v49  ;;  %v5085_v2 = vand.u32 4294901760, %v3723_v37  ;;  %v5087_v49 = vld [vmem:[#allocation69_spill] sm:$0xff] }
  0xba   :  { %1468 = vmatprep.subr.mxu1 %v5079_v41  ;;  %1183 = vmatpush2.msra.mxu0 %v5080_v30  ;;  %v5086_v30 = vld [vmem:[#allocation102_spill] sm:$0xff]  ;;  %v4788_v26 = vand.u32 4294901760, %v3751_v13 }
  0xbb   :  { %1470 = vmatpush2.msra.mxu1 %v5082_v44  ;;  %1186 = vmatprep.subr.mxu0 %v5083_v29  ;;  %v497_v41 = vsub.f32 %v3723_v37, %v5085_v2  ;;  %v492_v59 = vand.u32 4294901760, %v491_v21  ;;  %v5090_v37 = vld [vmem:[#allocation73_spill] sm:$0xff] }
  0xbc   :  { %1472 = vmatprep.subr.mxu1 %v5084_v40  ;;  %477 = vmatprep.mubr.f32.mxu0 %v476_v23  ;;  %v5088_v40 = vld [vmem:[#allocation104_spill] sm:$0xff]  ;;  %v5089_v23 = vld [vmem:[#allocation71_spill] sm:$0xff]  ;;  %v513_v21 = vsub.f32 %v3751_v13, %v4788_v26 }
  0xbd   :  { %994 = vmatprep.mubr.f32.mxu1 %v3613_v27  ;;  %1189 = vmatpush2.msra.mxu0 %v5086_v30  ;;  %v498_v2 = vand.u32 4294901760, %v497_v41  ;;  %v507_v27 = vsub.f32 %v3741_v58, %v4785_v14  ;;  %v5092_v41 = vld [vmem:[#allocation77_spill] sm:$0xff]  ;;  %v5093_v14 = vld [vmem:[#allocation79_spill] sm:$0xff] }
  0xbe   :  { %1474 = vmatpush2.msra.mxu1 %v5087_v49  ;;  %483 = vmatmul.mubr.f32.gmra.mxu0 %v482_v62  ;;  %v5091_v62 = vld [vmem:[#allocation75_spill] sm:$0xff]  ;;  %v5094_v58 = vld [vmem:[#allocation81_spill] sm:$0xff] }
  0xbf   :  { %996 = vmatmul.mubr.f32.gmra.mxu1 %v3622_v12  ;;  %1192 = vmatprep.subr.mxu0 %v5088_v40  ;;  %v508_v12 = vand.u32 4294901760, %v507_v27  ;;  %v5095_v26 = vld [vmem:[#allocation83_spill] sm:$0xff]  ;;  %v5096_v27 = vld [vmem:[#allocation85_spill] sm:$0xff] }
  0xc0   :  { %1476 = vmatprep.subr.mxu1 %v5089_v23  ;;  %1195 = vmatpush2.msra.mxu0 %v3256_v36 }
  0xc1   :  { %1478 = vmatpush2.msra.mxu1 %v5090_v37  ;;  %1198 = vmatprep.subr.mxu0 %v3274_v32 }
  0xc2   :  { %1480 = vmatprep.subr.mxu1 %v5091_v62  ;;  %493 = vmatprep.mubr.f32.mxu0 %v492_v59  ;;  %v514_v59 = vand.u32 4294901760, %v513_v21  ;;  %v5098_v21 = vld [vmem:[#allocation89_spill] sm:$0xff] }
  0xc3   :  { %1002 = vmatprep.mubr.f32.mxu1 %v3641_v39  ;;  %1201 = vmatpush2.msra.mxu0 %v3291_v51 }
  0xc4   :  { %1482 = vmatpush2.msra.mxu1 %v5092_v41  ;;  %499 = vmatmul.mubr.f32.gmra.mxu0 %v498_v2  ;;  %v5097_v2 = vld [vmem:[#allocation87_spill] sm:$0xff] }
  0xc5   :  { %1004 = vmatmul.mubr.f32.gmra.mxu1 %v3650_v60  ;;  %1204 = vmatprep.subr.mxu0 %v3301_v28  ;;  %v5103_v60 = vld [vmem:[#allocation11_spill] sm:$0xff] }
  0xc6   :  { %1484 = vmatprep.subr.mxu1 %v5093_v14  ;;  %1207 = vmatpush2.msra.mxu0 %v3310_v52  ;;  %v5104_v39 = vand.u32 4294901760, %v5103_v60  ;;  %v5115_v60 = vld [vmem:[#allocation115_spill] sm:$0xff] }
  0xc7   :  { %1486 = vmatpush2.msra.mxu1 %v5094_v58  ;;  %1210 = vmatprep.subr.mxu0 %v3319_v19 }
  0xc8   :  { %1488 = vmatprep.subr.mxu1 %v5095_v26  ;;  %509 = vmatprep.mubr.f32.mxu0 %v508_v12  ;;  %v5099_v12 = vld [vmem:[#allocation91_spill] sm:$0xff] }
  0xc9   :  { %1010 = vmatprep.mubr.f32.mxu1 %v3669_v20  ;;  %1213 = vmatpush2.msra.mxu0 %v3344_v46  ;;  %v5100_v20 = vld [vmem:[#allocation109_spill] sm:$0xff] }
  0xca   :  { %1490 = vmatpush2.msra.mxu1 %v5096_v27  ;;  %515 = vmatmul.mubr.f32.gmra.mxu0 %v514_v59  ;;  %v5101_v59 = vld [vmem:[#allocation93_spill] sm:$0xff] }
  0xcb   :  { %1012 = vmatmul.mubr.f32.gmra.mxu1 %v3678_v31  ;;  %1216 = vmatprep.subr.mxu0 %v3358_v43  ;;  %v5102_v31 = vld [vmem:[#allocation95_spill] sm:$0xff] }
  0xcc   :  { %1492 = vmatprep.subr.mxu1 %v5097_v2  ;;  %1219 = vmatpush2.msra.mxu0 %v3362_v47 }
  0xcd   :  { %1494 = vmatpush2.msra.mxu1 %v5098_v21  ;;  %1222 = vmatprep.subr.mxu0 %v3375_v24  ;;  %v5105_v24 = vld [vmem:[#allocation97_spill] sm:$0xff] }
  0xce   :  { %1496 = vmatprep.subr.mxu1 %v5099_v12  ;;  %1018 = vmatprep.mubr.f32.mxu1 %v3697_v56  ;;  %v5106_v12 = vld [vmem:[#allocation13_spill] sm:$0xff]  ;;  %v5108_v56 = vld [vmem:[#allocation99_spill] sm:$0xff] }
  0xcf   :  { %1225 = vmatpush2.msra.mxu0 %v3383_v7  ;;  %1228 = vmatprep.mubr.f32.mxu0 %v5100_v20  ;;  %v5107_v21 = vand.u32 4294901760, %v5106_v12  ;;  %v5109_v7 = vld [vmem:[#allocation15_spill] sm:$0xff] }
  0xd0   :  { %1498 = vmatpush2.msra.mxu1 %v5101_v59  ;;  %1231 = vmatmul.mubr.f32.vlgmr.msra.gmra.mxu0 %v3314_v1  ;;  %v5110_v47 = vand.u32 4294901760, %v5109_v7  ;;  %v5111_v59 = vld [vmem:[#allocation112_spill] sm:$0xff]  ;;  %v5118_v7 = vld [vmem:[#allocation105_spill] sm:$0xff] }
  0xd1   :  { %1020 = vmatmul.mubr.f32.gmra.mxu1 %v3706_v53  ;;  %1500 = vmatprep.subr.mxu1 %v5102_v31  ;;  %v5112_v53 = vld [vmem:[#allocation101_spill] sm:$0xff] }
  0xd2   :  { %1711 = vmatprep.subr.mxu0 %v5104_v39  ;;  %1502 = vmatpush2.msra.mxu1 %v5105_v24  ;;  %v5113_v31 = vld [vmem:[#allocation17_spill] sm:$0xff]  ;;  %v5116_v39 = vld [vmem:[#allocation103_spill] sm:$0xff] }
  0xd3   :  { %1715 = vmatpush1.msra.mxu0 %v5107_v21  ;;  %1504 = vmatprep.subr.mxu1 %v5108_v56  ;;  %v5114_v2 = vand.u32 4294901760, %v5113_v31  ;;  %v5117_v21 = vand.u32 4294901760, %v2565_v35  ;;  %v5123_v31 = vld [vmem:[#allocation119_spill] sm:$0xff] }
  0xd4   :  { %1719 = vmatprep.subr.mxu0 %v5110_v47  ;;  %1026 = vmatprep.mubr.f32.mxu1 %v3725_v33  ;;  %v5119_v47 = vld [vmem:[#allocation20_spill] sm:$0xff]  ;;  %v5121_v33 = vld [vmem:[#allocation106_spill] sm:$0xff] }
  0xd5   :  { %1238 = vmatprep.mubr.f32.mxu0 %v5111_v59  ;;  %1506 = vmatpush2.msra.mxu1 %v5112_v53  ;;  %v5120_v12 = vand.u32 4294901760, %v5119_v47  ;;  %v5122_v53 = vand.u32 4294901760, %v2592_v45  ;;  %v5129_v47 = vand.u32 4294901760, %v2630_v0  ;;  %v5130_v45 = vand.u32 4294901760, %v2641_v8 }
  0xd6   :  { %1723 = vmatpush1.msra.mxu0 %v5114_v2  ;;  %1028 = vmatmul.mubr.f32.gmra.mxu1 %v3734_v18  ;;  %v5124_v2 = vld [vmem:[#allocation107_spill] sm:$0xff]  ;;  %v5125_v18 = vand.u32 4294901760, %v5100_v20  ;;  %v5132_v20 = vld [vmem:[#allocation122_spill] sm:$0xff]  ;;  %v5134_v0 = vand.u32 4294901760, %v2664_v48  ;;  %v5136_v8 = vand.u32 4294901760, %v5115_v60  ;;  %v5141_v48 = vand.u32 4294901760, %v2724_v63 }
  0xd7   :  { %1241 = vmatmul.mubr.f32.gmra.mxu0 %v5115_v60  ;;  %1508 = vmatprep.subr.mxu1 %v5116_v39  ;;  %v5126_v39 = vld [vmem:[#allocation23_spill] sm:$0xff]  ;;  %v5154_v60 = vld [vmem:[#allocation16_spill] sm:$0xff] }
  0xd8   :  { %1727 = vmatprep.subr.mxu0 %v5117_v21  ;;  %1510 = vmatpush2.msra.mxu1 %v5118_v7  ;;  %v5127_v35 = vand.u32 4294901760, %v5126_v39  ;;  %v5128_v21 = vand.u32 4294901760, %v3314_v1  ;;  %v5133_v1 = vand.u32 4294901760, %v5111_v59  ;;  %v5152_v59 = vld [vmem:[#allocation38_spill] sm:$0xff] }
  0xd9   :  { %1731 = vmatpush1.msra.mxu0 %v5120_v12  ;;  %1512 = vmatprep.subr.mxu1 %v5121_v33  ;;  %v5157_v12 = vld [vmem:[#allocation40_spill] sm:$0xff] }
  0xda   :  { %1735 = vmatprep.subr.mxu0 %v5122_v53  ;;  %1248 = vmatprep.mubr.f32.mxu0 %v5123_v31  ;;  %v5131_v53 = vand.u32 4294901760, %v2652_v42  ;;  %v5139_v42 = vand.u32 4294901760, %v2711_v54 }
  0xdb   :  { %1514 = vmatpush2.msra.mxu1 %v5124_v2  ;;  %1518 = vmatprep.mubr.f32.mxu1 %v5125_v18  ;;  %v5149_v18 = vld [vmem:[#allocation14_spill] sm:$0xff] }
  0xdc   :  { %1739 = vmatpush1.msra.mxu0 %v5127_v35  ;;  %1522 = vmatmul.mubr.f32.vlgmr.msra.gmra.mxu1 %v5128_v21  ;;  %v5159_v35 = vld [vmem:[#allocation18_spill] sm:$0xff] }
  0xdd   :  { %1251 = vmatmul.mubr.f32.gmra.mxu0 %v3416_v25  ;;  %1743 = vmatprep.subr.mxu0 %v5129_v47  ;;  %v5160_v21 = vld [vmem:[#allocation42_spill] sm:$0xff] }
  0xde   :  { %2094 = vmatprep.subr.mxu1 %v2503_v3  ;;  %1747 = vmatpush1.msra.mxu0 %v5130_v45  ;;  %v5135_v3 = vld [vmem:[#allocation127_spill] sm:$0xff]  ;;  %v5161_v47 = vand.u32 4294901760, %v5160_v21  ;;  %v5192_v21 = vld [vmem:[#allocation58_spill] sm:$0xff] }
  0xdf   :  { %2096 = vmatpush1.msra.mxu1 %v2505_v4  ;;  %1751 = vmatprep.subr.mxu0 %v5131_v53  ;;  %v5137_v4 = vand.u32 4294901760, %v2678_v57  ;;  %v5146_v57 = vld [vmem:[#allocation12_spill] sm:$0xff]  ;;  %v5156_v39 = vand.u32 4294901760, %v5135_v3  ;;  %v5162_v45 = vld [vmem:[#allocation19_spill] sm:$0xff] }
  0xe0   :  { %2098 = vmatprep.subr.mxu1 %v2507_v5  ;;  %1258 = vmatprep.mubr.f32.mxu0 %v5132_v20  ;;  %v5138_v5 = vand.u32 4294901760, %v2690_v6  ;;  %v5147_v6 = vld [vmem:[#allocation36_spill] sm:$0xff] }
  0xe1   :  { %1530 = vmatprep.mubr.f32.mxu1 %v5133_v1  ;;  %1755 = vmatpush1.msra.mxu0 %v5134_v0  ;;  %v5148_v63 = vand.u32 4294901760, %v5147_v6  ;;  %v5163_v53 = vld [vmem:[#allocation44_spill] sm:$0xff]  ;;  %v5165_v1 = vld [vmem:[#allocation21_spill] sm:$0xff] }
  0xe2   :  { %2100 = vmatpush1.msra.mxu1 %v2509_v9  ;;  %1261 = vmatmul.mubr.f32.gmra.mxu0 %v5135_v3  ;;  %v5140_v9 = vand.u32 4294901760, %v5123_v31  ;;  %v5158_v31 = vand.u32 4294901760, %v5157_v12  ;;  %v5166_v0 = vld [vmem:[#allocation133_spill] sm:$0xff]  ;;  %v5167_v3 = vand.u32 4294901760, %v3440_v50  ;;  %v5189_v12 = vld [vmem:[#allocation56_spill] sm:$0xff] }
  0xe3   :  { %1534 = vmatmul.mubr.f32.gmra.mxu1 %v5136_v8  ;;  %1759 = vmatprep.subr.mxu0 %v5137_v4  ;;  %v5168_v8 = vld [vmem:[#allocation46_spill] sm:$0xff] }
  0xe4   :  { %2102 = vmatprep.subr.mxu1 %v2511_v10  ;;  %1763 = vmatpush1.msra.mxu0 %v5138_v5  ;;  %v5142_v10 = vand.u32 4294901760, %v3416_v25  ;;  %v5151_v25 = vand.u32 4294901760, %v5132_v20  ;;  %v5164_v20 = vand.u32 4294901760, %v5163_v53  ;;  %v5169_v4 = vand.u32 4294901760, %v5168_v8  ;;  %v5170_v5 = vld [vmem:[#allocation22_spill] sm:$0xff] }
  0xe5   :  { %2104 = vmatpush1.msra.mxu1 %v2513_v11  ;;  %1767 = vmatprep.subr.mxu0 %v5139_v42  ;;  %v5143_v11 = vand.u32 4294901760, %v2742_v55  ;;  %v5153_v55 = vand.u32 4294901760, %v5152_v59  ;;  %v5171_v42 = vld [vmem:[#allocation134_spill] sm:$0xff] }
  0xe6   :  { %2106 = vmatprep.subr.mxu1 %v2516_v15  ;;  %1268 = vmatprep.mubr.f32.mxu0 %v3440_v50  ;;  %v5144_v15 = vld [vmem:[#allocation34_spill] sm:$0xff]  ;;  %v5178_v50 = vld [vmem:[#allocation25_spill] sm:$0xff] }
  0xe7   :  { %1542 = vmatprep.mubr.f32.mxu1 %v5140_v9  ;;  %1771 = vmatpush1.msra.mxu0 %v5141_v48  ;;  %v5145_v54 = vand.u32 4294901760, %v5144_v15  ;;  %v5172_v9 = vand.u32 4294901760, %v3452_v61  ;;  %v5173_v48 = vld [vmem:[#allocation48_spill] sm:$0xff]  ;;  %v5176_v15 = vld [vmem:[#allocation50_spill] sm:$0xff] }
  0xe8   :  { %2108 = vmatpush1.msra.mxu1 %v2518_v16  ;;  %1271 = vmatmul.mubr.f32.gmra.mxu0 %v3452_v61  ;;  %v5150_v16 = vld [vmem:[#allocation129_spill] sm:$0xff] }
  0xe9   :  { %1546 = vmatmul.mubr.f32.gmra.mxu1 %v5142_v10  ;;  %1775 = vmatprep.subr.mxu0 %v5143_v11  ;;  %v5174_v10 = vand.u32 4294901760, %v5173_v48  ;;  %v5175_v11 = vld [vmem:[#allocation24_spill] sm:$0xff]  ;;  %v5183_v61 = vand.u32 4294901760, %v5150_v16 }
  0xea   :  { %2110 = vmatprep.subr.mxu1 %v2520_v17  ;;  %1779 = vmatpush1.msra.mxu0 %v5145_v54  ;;  %v5155_v17 = vld [vmem:[#allocation130_spill] sm:$0xff]  ;;  %v5177_v54 = vand.u32 4294901760, %v5176_v15  ;;  %v5205_v48 = vld [vmem:[#allocation64_spill] sm:$0xff] }
  0xeb   :  { %2112 = vmatpush1.msra.mxu1 %v5146_v57  ;;  %1783 = vmatprep.subr.mxu0 %v5148_v63  ;;  %v5179_v57 = vld [vmem:[#allocation52_spill] sm:$0xff]  ;;  %v5181_v63 = vld [vmem:[#allocation26_spill] sm:$0xff] }
  0xec   :  { %2114 = vmatprep.subr.mxu1 %v5149_v18  ;;  %1278 = vmatprep.mubr.f32.mxu0 %v5150_v16  ;;  %v5180_v6 = vand.u32 4294901760, %v5179_v57  ;;  %v5182_v18 = vld [vmem:[#allocation137_spill] sm:$0xff]  ;;  %v5208_v15 = vld [vmem:[#allocation66_spill] sm:$0xff] }
  0xed   :  { %1554 = vmatprep.mubr.f32.mxu1 %v5151_v25  ;;  %1787 = vmatpush1.msra.mxu0 %v5153_v55  ;;  %v5184_v25 = vld [vmem:[#allocation54_spill] sm:$0xff]  ;;  %v5186_v55 = vld [vmem:[#allocation27_spill] sm:$0xff]  ;;  %v5194_v16 = vld [vmem:[#allocation29_spill] sm:$0xff] }
  0xee   :  { %2116 = vmatpush1.msra.mxu1 %v5154_v60  ;;  %1281 = vmatmul.mubr.f32.gmra.mxu0 %v5155_v17  ;;  %v5185_v59 = vand.u32 4294901760, %v5184_v25  ;;  %v5187_v60 = vld [vmem:[#allocation138_spill] sm:$0xff] }
  0xef   :  { %1558 = vmatmul.mubr.f32.gmra.mxu1 %v5156_v39  ;;  %1791 = vmatprep.subr.mxu0 %v5158_v31  ;;  %v5188_v39 = vand.u32 4294901760, %v5155_v17  ;;  %v5190_v31 = vand.u32 4294901760, %v5189_v12  ;;  %v5199_v17 = vand.u32 4294901760, %v5166_v0  ;;  %v5221_v12 = vld [vmem:[#allocation72_spill] sm:$0xff] }
  0xf0   :  { %2118 = vmatprep.subr.mxu1 %v5159_v35  ;;  %1795 = vmatpush1.msra.mxu0 %v5161_v47  ;;  %v5191_v35 = vld [vmem:[#allocation28_spill] sm:$0xff]  ;;  %v5193_v47 = vand.u32 4294901760, %v5192_v21  ;;  %v5224_v21 = vld [vmem:[#allocation74_spill] sm:$0xff] }
  0xf1   :  { %2120 = vmatpush1.msra.mxu1 %v5162_v45  ;;  %1799 = vmatprep.subr.mxu0 %v5164_v20  ;;  %v5195_v45 = vld [vmem:[#allocation60_spill] sm:$0xff]  ;;  %v5197_v20 = vld [vmem:[#allocation30_spill] sm:$0xff] }
  0xf2   :  { %2122 = vmatprep.subr.mxu1 %v5165_v1  ;;  %1288 = vmatprep.mubr.f32.mxu0 %v5166_v0  ;;  %v5196_v53 = vand.u32 4294901760, %v5195_v45  ;;  %v5198_v1 = vld [vmem:[#allocation141_spill] sm:$0xff] }
  0xf3   :  { %1566 = vmatprep.mubr.f32.mxu1 %v5167_v3  ;;  %1803 = vmatpush1.msra.mxu0 %v5169_v4  ;;  %v5200_v3 = vld [vmem:[#allocation62_spill] sm:$0xff]  ;;  %v5202_v4 = vld [vmem:[#allocation31_spill] sm:$0xff]  ;;  %v5210_v0 = vld [vmem:[#allocation33_spill] sm:$0xff] }
  0xf4   :  { %2124 = vmatpush1.msra.mxu1 %v5170_v5  ;;  %1291 = vmatmul.mubr.f32.gmra.mxu0 %v5171_v42  ;;  %v5201_v8 = vand.u32 4294901760, %v5200_v3  ;;  %v5203_v5 = vld [vmem:[#allocation142_spill] sm:$0xff] }
  0xf5   :  { %1570 = vmatmul.mubr.f32.gmra.mxu1 %v5172_v9  ;;  %1807 = vmatprep.subr.mxu0 %v5174_v10  ;;  %v5204_v9 = vand.u32 4294901760, %v5171_v42  ;;  %v5206_v10 = vand.u32 4294901760, %v5205_v48  ;;  %v5215_v42 = vand.u32 4294901760, %v5182_v18  ;;  %v5237_v48 = vld [vmem:[#allocation80_spill] sm:$0xff] }
  0xf6   :  { %2126 = vmatprep.subr.mxu1 %v5175_v11  ;;  %1811 = vmatpush1.msra.mxu0 %v5177_v54  ;;  %v5207_v11 = vld [vmem:[#allocation32_spill] sm:$0xff]  ;;  %v5209_v54 = vand.u32 4294901760, %v5208_v15  ;;  %v5240_v15 = vld [vmem:[#allocation82_spill] sm:$0xff] }
  0xf7   :  { %2128 = vmatpush1.msra.mxu1 %v5178_v50  ;;  %1815 = vmatprep.subr.mxu0 %v5180_v6  ;;  %v5211_v50 = vld [vmem:[#allocation68_spill] sm:$0xff]  ;;  %v5213_v6 = vld [vmem:[#allocation35_spill] sm:$0xff] }
  0xf8   :  { %2130 = vmatprep.subr.mxu1 %v5181_v63  ;;  %1298 = vmatprep.mubr.f32.mxu0 %v5182_v18  ;;  %v5212_v57 = vand.u32 4294901760, %v5211_v50  ;;  %v5214_v63 = vld [vmem:[#allocation145_spill] sm:$0xff] }
  0xf9   :  { %1578 = vmatprep.mubr.f32.mxu1 %v5183_v61  ;;  %1819 = vmatpush1.msra.mxu0 %v5185_v59  ;;  %v5216_v61 = vld [vmem:[#allocation70_spill] sm:$0xff]  ;;  %v5218_v59 = vld [vmem:[#allocation37_spill] sm:$0xff] }
  0xfa   :  { %2132 = vmatpush1.msra.mxu1 %v5186_v55  ;;  %1301 = vmatmul.mubr.f32.gmra.mxu0 %v5187_v60  ;;  %v5217_v25 = vand.u32 4294901760, %v5216_v61  ;;  %v5219_v55 = vld [vmem:[#allocation146_spill] sm:$0xff]  ;;  %v5226_v18 = vld [vmem:[#allocation41_spill] sm:$0xff] }
  0xfb   :  { %1582 = vmatmul.mubr.f32.gmra.mxu1 %v5188_v39  ;;  %1823 = vmatprep.subr.mxu0 %v5190_v31  ;;  %v5220_v39 = vand.u32 4294901760, %v5187_v60  ;;  %v5222_v31 = vand.u32 4294901760, %v5221_v12  ;;  %v5231_v60 = vand.u32 4294901760, %v5198_v1  ;;  %v5253_v12 = vld [vmem:[#allocation88_spill] sm:$0xff] }
  0xfc   :  { %2134 = vmatprep.subr.mxu1 %v5191_v35  ;;  %1827 = vmatpush1.msra.mxu0 %v5193_v47  ;;  %v5223_v35 = vld [vmem:[#allocation39_spill] sm:$0xff]  ;;  %v5225_v47 = vand.u32 4294901760, %v5224_v21  ;;  %v5256_v21 = vld [vmem:[#allocation90_spill] sm:$0xff] }
  0xfd   :  { %2136 = vmatpush1.msra.mxu1 %v5194_v16  ;;  %1831 = vmatprep.subr.mxu0 %v5196_v53  ;;  %v5227_v16 = vld [vmem:[#allocation76_spill] sm:$0xff]  ;;  %v5229_v53 = vld [vmem:[#allocation43_spill] sm:$0xff] }
  0xfe   :  { %2138 = vmatprep.subr.mxu1 %v5197_v20  ;;  %1308 = vmatprep.mubr.f32.mxu0 %v5198_v1  ;;  %v5228_v45 = vand.u32 4294901760, %v5227_v16  ;;  %v5230_v20 = vld [vmem:[#allocation149_spill] sm:$0xff] }
  0xff   :  { %1590 = vmatprep.mubr.f32.mxu1 %v5199_v17  ;;  %1835 = vmatpush1.msra.mxu0 %v5201_v8  ;;  %v5232_v17 = vld [vmem:[#allocation78_spill] sm:$0xff]  ;;  %v5234_v8 = vld [vmem:[#allocation45_spill] sm:$0xff] }
 0x100   :  { %2140 = vmatpush1.msra.mxu1 %v5202_v4  ;;  %1311 = vmatmul.mubr.f32.gmra.mxu0 %v5203_v5  ;;  %v5233_v3 = vand.u32 4294901760, %v5232_v17  ;;  %v5235_v4 = vld [vmem:[#allocation150_spill] sm:$0xff]  ;;  %v5242_v1 = vld [vmem:[#allocation49_spill] sm:$0xff] }
 0x101   :  { %1594 = vmatmul.mubr.f32.gmra.mxu1 %v5204_v9  ;;  %1839 = vmatprep.subr.mxu0 %v5206_v10  ;;  %v5236_v9 = vand.u32 4294901760, %v5203_v5  ;;  %v5238_v10 = vand.u32 4294901760, %v5237_v48  ;;  %v5247_v5 = vand.u32 4294901760, %v5214_v63  ;;  %v5260_v16 = vld [vmem:[#allocation157_spill] sm:$0xff]  ;;  %v5265_v17 = vld [vmem:[#allocation158_spill] sm:$0xff]  ;;  %v5272_v48 = vld [vmem:[#allocation67_spill] sm:$0xff] }
 0x102   :  { %2142 = vmatprep.subr.mxu1 %v5207_v11  ;;  %1843 = vmatpush2.msra.mxu0 %v5209_v54  ;;  %v5239_v11 = vld [vmem:[#allocation47_spill] sm:$0xff]  ;;  %v5241_v54 = vand.u32 4294901760, %v5240_v15 }
 0x103   :  { %2144 = vmatpush1.msra.mxu1 %v5210_v0  ;;  %1847 = vmatprep.subr.mxu0 %v5212_v57  ;;  %v5243_v0 = vld [vmem:[#allocation84_spill] sm:$0xff]  ;;  %v5245_v57 = vld [vmem:[#allocation51_spill] sm:$0xff] }
 0x104   :  { %2146 = vmatprep.subr.mxu1 %v5213_v6  ;;  %1318 = vmatprep.mubr.f32.mxu0 %v5214_v63  ;;  %v5244_v50 = vand.u32 4294901760, %v5243_v0  ;;  %v5246_v6 = vld [vmem:[#allocation153_spill] sm:$0xff]  ;;  %v5258_v63 = vld [vmem:[#allocation92_spill] sm:$0xff] }
 0x105   :  { %1602 = vmatprep.mubr.f32.mxu1 %v5215_v42  ;;  %1851 = vmatpush2.msra.mxu0 %v5217_v25  ;;  %v5248_v42 = vld [vmem:[#allocation86_spill] sm:$0xff]  ;;  %v5250_v25 = vld [vmem:[#allocation53_spill] sm:$0xff]  ;;  %v5298_v0 = vld [vmem:[#allocation116_spill] sm:$0xff] }
 0x106   :  { %2148 = vmatpush1.msra.mxu1 %v5218_v59  ;;  %1321 = vmatmul.mubr.f32.gmra.mxu0 %v5219_v55  ;;  %v5249_v61 = vand.u32 4294901760, %v5248_v42  ;;  %v5251_v59 = vld [vmem:[#allocation154_spill] sm:$0xff] }
 0x107   :  { %1606 = vmatmul.mubr.f32.gmra.mxu1 %v5220_v39  ;;  %1855 = vmatprep.subr.mxu0 %v5222_v31  ;;  %v5252_v39 = vand.u32 4294901760, %v5219_v55  ;;  %v5254_v31 = vand.u32 4294901760, %v5253_v12  ;;  %v5261_v55 = vand.u32 4294901760, %v5230_v20  ;;  %v5277_v15 = vand.u32 4294901760, %v5251_v59  ;;  %v5306_v42 = vld [vmem:[#allocation110_spill] sm:$0xff]  ;;  %v5310_v12 = vld [vmem:[#allocation111_spill] sm:$0xff] }
 0x108   :  { %2150 = vmatprep.subr.mxu1 %v5223_v35  ;;  %1859 = vmatpush2.msra.mxu0 %v5225_v47  ;;  %v5255_v35 = vld [vmem:[#allocation55_spill] sm:$0xff]  ;;  %v5257_v47 = vand.u32 4294901760, %v5256_v21  ;;  %v5313_v21 = vand.u32 4294901760, %v3751_v13 }
 0x109   :  { %2152 = vmatpush1.msra.mxu1 %v5226_v18  ;;  %1863 = vmatprep.subr.mxu0 %v5228_v45  ;;  %v5259_v18 = vand.u32 4294901760, %v5258_v63  ;;  %v5262_v45 = vld [vmem:[#allocation94_spill] sm:$0xff] }
 0x10a   :  { %2154 = vmatprep.subr.mxu1 %v5229_v53  ;;  %1328 = vmatprep.mubr.f32.mxu0 %v5230_v20  ;;  %v5263_v53 = vand.u32 4294901760, %v5262_v45  ;;  %v5271_v20 = vand.u32 4294901760, %v5083_v29  ;;  %v5279_v29 = vand.u32 4294901760, %v3256_v36  ;;  %v5285_v36 = vand.u32 4294901760, %v5265_v17 }
 0x10b   :  { %1614 = vmatprep.mubr.f32.mxu1 %v5231_v60  ;;  %1867 = vmatpush2.msra.mxu0 %v5233_v3  ;;  %v5264_v60 = vld [vmem:[#allocation61_spill] sm:$0xff]  ;;  %v5266_v3 = vand.u32 4294901760, %v5235_v4 }
 0x10c   :  { %2156 = vmatpush1.msra.mxu1 %v5234_v8  ;;  %1331 = vmatmul.mubr.f32.gmra.mxu0 %v5235_v4  ;;  %v5268_v8 = vld [vmem:[#allocation63_spill] sm:$0xff]  ;;  %v5274_v4 = vand.u32 4294901760, %v5246_v6 }
 0x10d   :  { %1618 = vmatmul.mubr.f32.gmra.mxu1 %v5236_v9  ;;  %1871 = vmatprep.subr.mxu0 %v5238_v10  ;;  %v5273_v10 = vld [vmem:[#allocation161_spill] sm:$0xff] }
 0x10e   :  { %2158 = vmatprep.subr.mxu1 %v5239_v11  ;;  %1875 = vmatpush2.msra.mxu0 %v5241_v54  ;;  %v5276_v11 = vld [vmem:[#allocation162_spill] sm:$0xff]  ;;  %v5282_v54 = vand.u32 4294901760, %v5260_v16 }
 0x10f   :  { %2160 = vmatpush2.msra.mxu1 %v5242_v1  ;;  %1879 = vmatprep.subr.mxu0 %v5244_v50  ;;  %v5297_v1 = vld [vmem:[#allocation89_spill] sm:$0xff]  ;;  %v5300_v50 = vld [vmem:[#allocation91_spill] sm:$0xff] }
 0x110   :  { %2162 = vmatprep.subr.mxu1 %v5245_v57  ;;  %1338 = vmatprep.mubr.f32.mxu0 %v5246_v6  ;;  %v5302_v57 = vld [vmem:[#allocation118_spill] sm:$0xff] }
 0x111   :  { %1626 = vmatprep.mubr.f32.mxu1 %v5247_v5  ;;  %1883 = vmatpush2.msra.mxu0 %v5249_v61  ;;  %v5303_v6 = vand.u32 4294901760, %v5302_v57  ;;  %v5305_v5 = vld [vmem:[#allocation93_spill] sm:$0xff] }
 0x112   :  { %2164 = vmatpush2.msra.mxu1 %v5250_v25  ;;  %1341 = vmatmul.mubr.f32.gmra.mxu0 %v5251_v59  ;;  %v5308_v25 = vld [vmem:[#allocation95_spill] sm:$0xff] }
 0x113   :  { %1630 = vmatmul.mubr.f32.gmra.mxu1 %v5252_v39  ;;  %1887 = vmatprep.subr.mxu0 %v5254_v31  ;;  %v5311_v31 = vld [vmem:[#allocation101_spill] sm:$0xff] }
 0x114   :  { %2166 = vmatprep.subr.mxu1 %v5255_v35  ;;  %1891 = vmatpush2.msra.mxu0 %v5257_v47  ;;  %v5312_v35 = vld [vmem:[#allocation113_spill] sm:$0xff]  ;;  %v5314_v47 = vld [vmem:[#allocation103_spill] sm:$0xff] }
 0x115   :  { %2168 = vmatpush2.msra.mxu1 %v5070_v38  ;;  %1895 = vmatprep.subr.mxu0 %v5259_v18  ;;  %v5267_v38 = vand.u32 4294901760, %v5078_v34  ;;  %v5275_v34 = vand.u32 4294901760, %v5086_v30  ;;  %v5280_v30 = vand.u32 4294901760, %v3274_v32  ;;  %v5286_v32 = vand.u32 4294901760, %v3301_v28  ;;  %v5317_v18 = vld [vmem:[#allocation121_spill] sm:$0xff] }
 0x116   :  { %2170 = vmatprep.subr.mxu1 %v5072_v22  ;;  %1348 = vmatprep.mubr.f32.mxu0 %v5260_v16  ;;  %v5269_v22 = vld [vmem:[#allocation98_spill] sm:$0xff]  ;;  %v5291_v28 = vand.u32 4294901760, %v3344_v46  ;;  %v5299_v46 = vand.u32 4294901760, %v5298_v0 }
 0x117   :  { %1638 = vmatprep.mubr.f32.mxu1 %v5261_v55  ;;  %1899 = vmatpush2.msra.mxu0 %v5263_v53  ;;  %v5270_v9 = vand.u32 4294901760, %v5269_v22  ;;  %v5318_v55 = vld [vmem:[#allocation123_spill] sm:$0xff] }
 0x118   :  { %2172 = vmatpush2.msra.mxu1 %v5264_v60  ;;  %1351 = vmatmul.mubr.f32.gmra.mxu0 %v5265_v17  ;;  %v5320_v17 = vld [vmem:[#allocation125_spill] sm:$0xff] }
 0x119   :  { %1642 = vmatmul.mubr.f32.gmra.mxu1 %v5266_v3  ;;  %1903 = vmatprep.subr.mxu0 %v5267_v38  ;;  %v5321_v3 = vld [vmem:[#allocation126_spill] sm:$0xff] }
 0x11a   :  { %2174 = vmatprep.subr.mxu1 %v5268_v8  ;;  %1907 = vmatpush2.msra.mxu0 %v5270_v9  ;;  %v5322_v9 = vld [vmem:[#allocation128_spill] sm:$0xff] }
 0x11b   :  { %2176 = vmatpush2.msra.mxu1 %v5082_v44  ;;  %1911 = vmatprep.subr.mxu0 %v5271_v20  ;;  %v5278_v44 = vand.u32 4294901760, %v5088_v40  ;;  %v5283_v40 = vand.u32 4294901760, %v3291_v51  ;;  %v5288_v51 = vand.u32 4294901760, %v3319_v19  ;;  %v5293_v19 = vand.u32 4294901760, %v3358_v43  ;;  %v5304_v43 = vld [vmem:[#allocation108_spill] sm:$0xff] }
 0x11c   :  { %2178 = vmatprep.subr.mxu1 %v5272_v48  ;;  %1358 = vmatprep.mubr.f32.mxu0 %v5273_v10  ;;  %v5323_v48 = vld [vmem:[#allocation131_spill] sm:$0xff] }
 0x11d   :  { %1650 = vmatprep.mubr.f32.mxu1 %v5274_v4  ;;  %1915 = vmatpush2.msra.mxu0 %v5275_v34 }
 0x11e   :  { %2180 = vmatpush2.msra.mxu1 %v5087_v49  ;;  %1361 = vmatmul.mubr.f32.gmra.mxu0 %v5276_v11  ;;  %v5281_v49 = vld [vmem:[#allocation165_spill] sm:$0xff] }
 0x11f   :  { %1654 = vmatmul.mubr.f32.gmra.mxu1 %v5277_v15  ;;  %1919 = vmatprep.subr.mxu0 %v5278_v44  ;;  %v5325_v44 = vld [vmem:[#allocation135_spill] sm:$0xff] }
 0x120   :  { %2182 = vmatprep.subr.mxu1 %v5089_v23  ;;  %1923 = vmatpush2.msra.mxu0 %v5279_v29  ;;  %v5284_v23 = vld [vmem:[#allocation166_spill] sm:$0xff] }
 0x121   :  { %2184 = vmatpush2.msra.mxu1 %v5090_v37  ;;  %1927 = vmatprep.subr.mxu0 %v5280_v30  ;;  %v5287_v37 = vand.u32 4294901760, %v3310_v52  ;;  %v5292_v52 = vand.u32 4294901760, %v5276_v11  ;;  %v5307_v61 = vand.u32 4294901760, %v5284_v23  ;;  %v5324_v11 = vld [vmem:[#allocation132_spill] sm:$0xff] }
 0x122   :  { %2186 = vmatprep.subr.mxu1 %v5091_v62  ;;  %1368 = vmatprep.mubr.f32.mxu0 %v5281_v49  ;;  %v5289_v62 = vld [vmem:[#allocation59_spill] sm:$0xff] }
 0x123   :  { %1662 = vmatprep.mubr.f32.mxu1 %v5282_v54  ;;  %1931 = vmatpush2.msra.mxu0 %v5283_v40  ;;  %v5309_v59 = vand.u32 4294901760, %v5289_v62  ;;  %v5326_v40 = vld [vmem:[#allocation136_spill] sm:$0xff] }
 0x124   :  { %2188 = vmatpush2.msra.mxu1 %v5092_v41  ;;  %1371 = vmatmul.mubr.f32.gmra.mxu0 %v5284_v23  ;;  %v5290_v41 = vand.u32 4294901760, %v5273_v10 }
 0x125   :  { %1666 = vmatmul.mubr.f32.gmra.mxu1 %v5285_v36  ;;  %1935 = vmatprep.subr.mxu0 %v5286_v32  ;;  %v5327_v36 = vld [vmem:[#allocation139_spill] sm:$0xff] }
 0x126   :  { %2190 = vmatprep.subr.mxu1 %v5093_v14  ;;  %1939 = vmatpush2.msra.mxu0 %v5287_v37 }
 0x127   :  { %2192 = vmatpush2.msra.mxu1 %v5094_v58  ;;  %1943 = vmatprep.subr.mxu0 %v5288_v51  ;;  %v5294_v58 = vld [vmem:[#allocation87_spill] sm:$0xff]  ;;  %v5328_v51 = vld [vmem:[#allocation140_spill] sm:$0xff] }
 0x128   :  { %2194 = vmatprep.subr.mxu1 %v5095_v26  ;;  %1378 = vmatprep.mubr.f32.mxu0 %v5289_v62  ;;  %v5295_v26 = vld [vmem:[#allocation114_spill] sm:$0xff] }
 0x129   :  { %1674 = vmatprep.mubr.f32.mxu1 %v5290_v41  ;;  %1947 = vmatpush2.msra.mxu0 %v5291_v28  ;;  %v5296_v14 = vand.u32 4294901760, %v5295_v26  ;;  %v5329_v28 = vld [vmem:[#allocation143_spill] sm:$0xff] }
 0x12a   :  { %2196 = vmatpush2.msra.mxu1 %v5096_v27  ;;  %1381 = vmatmul.mubr.f32.gmra.mxu0 %v3751_v13  ;;  %v5301_v27 = vand.u32 4294901760, %v5281_v49 }
 0x12b   :  { %1678 = vmatmul.mubr.f32.gmra.mxu1 %v5292_v52  ;;  %1951 = vmatprep.subr.mxu0 %v5293_v19 }
 0x12c   :  { %2198 = vmatprep.subr.mxu1 %v5294_v58  ;;  %1955 = vmatpush2.msra.mxu0 %v5296_v14  ;;  %v5330_v58 = vld [vmem:[#allocation144_spill] sm:$0xff]  ;;  %v5331_v14 = vld [vmem:[#allocation147_spill] sm:$0xff] }
 0x12d   :  { %2200 = vmatpush2.msra.mxu1 %v5297_v1  ;;  %1959 = vmatprep.subr.mxu0 %v5299_v46 }
 0x12e   :  { %2202 = vmatprep.subr.mxu1 %v5300_v50  ;;  %1686 = vmatprep.mubr.f32.mxu1 %v5301_v27  ;;  %v5332_v27 = vld [vmem:[#allocation148_spill] sm:$0xff] }
 0x12f   :  { %1963 = vmatpush2.msra.mxu0 %v5303_v6  ;;  %1965 = vmatprep.mubr.f32.mxu0 %v5304_v43  ;;  %v5333_v6 = vld [vmem:[#allocation151_spill] sm:$0xff] }
 0x130   :  { %2204 = vmatpush2.msra.mxu1 %v5305_v5  ;;  %1967 = vmatmul.mubr.f32.vlgmr.msra.gmra.mxu0 %v5306_v42 }
 0x131   :  { %1690 = vmatmul.mubr.f32.gmra.mxu1 %v5307_v61  ;;  %2206 = vmatprep.subr.mxu1 %v5308_v25 }
 0x132   :  { %2208 = vmatpush2.msra.mxu1 %v5105_v24  ;;  %1698 = vmatprep.mubr.f32.mxu1 %v5309_v59  ;;  %v5315_v24 = vld [vmem:[#allocation117_spill] sm:$0xff]  ;;  %v5335_v59 = vld [vmem:[#allocation155_spill] sm:$0xff] }
 0x133   :  { %v276_v39 = vpop.f32.mrf.mxu0  ;;  %2210 = vmatprep.subr.mxu1 %v5108_v56  ;;  %1973 = vmatprep.mubr.f32.mxu0 %v5310_v12  ;;  %v5316_v56 = vld [vmem:[#allocation120_spill] sm:$0xff] }
 0x134   :  { %2212 = vmatpush2.msra.mxu1 %v5311_v31  ;;  %1975 = vmatmul.mubr.f32.gmra.mxu0 %v5312_v35  ;;  %v5336_v31 = vld [vmem:[#allocation156_spill] sm:$0xff] }
 0x135   :  { %1702 = vmatmul.mubr.f32.gmra.mxu1 %v5313_v21  ;;  %2214 = vmatprep.subr.mxu1 %v5314_v47  ;;  %v278_v63 = vpop.f32.mrf.mxu0  ;;  %v5337_v21 = vld [vmem:[#allocation159_spill] sm:$0xff] }
 0x136   :  { %2216 = vmatpush2.msra.mxu1 %v5118_v7  ;;  %1981 = vmatprep.mubr.f32.mxu0 %v5315_v24 }
 0x137   :  { %2218 = vmatprep.subr.mxu1 %v5121_v33  ;;  %2222 = vmatprep.mubr.f32.mxu1 %v5304_v43  ;;  %v5319_v33 = vld [vmem:[#allocation124_spill] sm:$0xff] }
 0x138   :  { %2220 = vmatpush2.msra.mxu1 %v5124_v2  ;;  %1983 = vmatmul.mubr.f32.gmra.mxu0 %v5316_v56 }
 0x139   :  { %2224 = vmatmul.mubr.f32.vlgmr.msra.gmra.mxu1 %v5306_v42  ;;  %1989 = vmatprep.mubr.f32.mxu0 %v5317_v18  ;;  %v5334_v42 = vld [vmem:[#allocation152_spill] sm:$0xff] }
 0x13a   :  { %v292_v13 = vpop.f32.mrf.mxu0  ;;  %2230 = vmatprep.mubr.f32.mxu1 %v5310_v12 }
 0x13c   :  { %v294_v16 = vpop.f32.mrf.mxu0  ;;  %1991 = vmatmul.mubr.f32.gmra.mxu0 %v5318_v55  ;;  %v909_v7 = vpop.f32.mrf.mxu1 }
 0x13d   :  { %2232 = vmatmul.mubr.f32.gmra.mxu1 %v5312_v35  ;;  %1997 = vmatprep.mubr.f32.mxu0 %v5319_v33  ;;  %v4112_v45 = vadd.f32 %v909_v7, %v276_v39 }
 0x13e   :  { %2238 = vmatprep.mubr.f32.mxu1 %v5315_v24  ;;  %v911_v2 = vpop.f32.mrf.mxu1 }
 0x13f   :  { %v308_v53 = vpop.f32.mrf.mxu0  ;;  %v4115_v60 = vadd.f32 %v911_v2, %v278_v63 }
 0x140   :  { %1999 = vmatmul.mubr.f32.gmra.mxu0 %v5320_v17 }
 0x141   :  { %2240 = vmatmul.mubr.f32.gmra.mxu1 %v5316_v56  ;;  %2005 = vmatprep.mubr.f32.mxu0 %v5321_v3  ;;  %v310_v38 = vpop.f32.mrf.mxu0 }
 0x142   :  { %2246 = vmatprep.mubr.f32.mxu1 %v5317_v18  ;;  %v5338_v18 = vld [vmem:[#allocation160_spill] sm:$0xff] }
 0x143   :  { %v324_v8 = vpop.f32.mrf.mxu0  ;;  %v917_v22 = vpop.f32.mrf.mxu1 }
 0x144   :  { %2007 = vmatmul.mubr.f32.gmra.mxu0 %v5322_v9  ;;  %v4122_v20 = vadd.f32 %v917_v22, %v292_v13 }
 0x145   :  { %2248 = vmatmul.mubr.f32.gmra.mxu1 %v5318_v55  ;;  %2013 = vmatprep.mubr.f32.mxu0 %v5323_v48  ;;  %v326_v10 = vpop.f32.mrf.mxu0  ;;  %v919_v4 = vpop.f32.mrf.mxu1 }
 0x146   :  { %2254 = vmatprep.mubr.f32.mxu1 %v5319_v33  ;;  %v4127_v34 = vadd.f32 %v919_v4, %v294_v16  ;;  %v5339_v16 = vld [vmem:[#allocation163_spill] sm:$0xff]  ;;  %v5340_v33 = vld [vmem:[#allocation164_spill] sm:$0xff] }
 0x148   :  { %2015 = vmatmul.mubr.f32.gmra.mxu0 %v5324_v11  ;;  %v340_v15 = vpop.f32.mrf.mxu0 }
 0x149   :  { %2256 = vmatmul.mubr.f32.gmra.mxu1 %v5320_v17  ;;  %2021 = vmatprep.mubr.f32.mxu0 %v5325_v44  ;;  %v925_v29 = vpop.f32.mrf.mxu1  ;;  %v5341_v17 = vld [vmem:[#allocation167_spill] sm:$0xff] }
 0x14a   :  { %2262 = vmatprep.mubr.f32.mxu1 %v5321_v3  ;;  %v4133_v30 = vadd.f32 %v925_v29, %v308_v53  ;;  %v342_v49 = vpop.f32.mrf.mxu0 }
 0x14b   :  { %v927_v54 = vpop.f32.mrf.mxu1 }
 0x14c   :  { %2023 = vmatmul.mubr.f32.gmra.mxu0 %v5326_v40  ;;  %v4136_v23 = vadd.f32 %v927_v54, %v310_v38 }
 0x14d   :  { %2264 = vmatmul.mubr.f32.gmra.mxu1 %v5322_v9  ;;  %2029 = vmatprep.mubr.f32.mxu0 %v5327_v36 }
 0x14e   :  { %2270 = vmatprep.mubr.f32.mxu1 %v5323_v48  ;;  %v356_v32 = vpop.f32.mrf.mxu0 }
 0x14f   :  { %v933_v37 = vpop.f32.mrf.mxu1 }
 0x150   :  { %2031 = vmatmul.mubr.f32.gmra.mxu0 %v5328_v51  ;;  %v4142_v62 = vadd.f32 %v933_v37, %v324_v8  ;;  %v358_v41 = vpop.f32.mrf.mxu0  ;;  %v5342_v8 = vld [vmem:[#allocation57_spill] sm:$0xff] }
 0x151   :  { %2272 = vmatmul.mubr.f32.gmra.mxu1 %v5324_v11  ;;  %2037 = vmatprep.mubr.f32.mxu0 %v5329_v28  ;;  %v935_v52 = vpop.f32.mrf.mxu1 }
 0x152   :  { %2278 = vmatprep.mubr.f32.mxu1 %v5325_v44  ;;  %v4147_v19 = vadd.f32 %v935_v52, %v326_v10 }
 0x154   :  { %2039 = vmatmul.mubr.f32.gmra.mxu0 %v5330_v58  ;;  %v372_v26 = vpop.f32.mrf.mxu0 }
 0x155   :  { %2280 = vmatmul.mubr.f32.gmra.mxu1 %v5326_v40  ;;  %2045 = vmatprep.mubr.f32.mxu0 %v5331_v14  ;;  %v941_v1 = vpop.f32.mrf.mxu1 }
 0x156   :  { %2286 = vmatprep.mubr.f32.mxu1 %v5327_v36  ;;  %v4153_v0 = vadd.f32 %v941_v1, %v340_v15  ;;  %v374_v46 = vpop.f32.mrf.mxu0 }
 0x157   :  { %v943_v50 = vpop.f32.mrf.mxu1 }
 0x158   :  { %2047 = vmatmul.mubr.f32.gmra.mxu0 %v5332_v27  ;;  %v4156_v57 = vadd.f32 %v943_v50, %v342_v49 }
 0x159   :  { %2288 = vmatmul.mubr.f32.gmra.mxu1 %v5328_v51  ;;  %2053 = vmatprep.mubr.f32.mxu0 %v5333_v6 }
 0x15a   :  { %2294 = vmatprep.mubr.f32.mxu1 %v5329_v28  ;;  %v388_v43 = vpop.f32.mrf.mxu0 }
 0x15b   :  { %v949_v5 = vpop.f32.mrf.mxu1 }
 0x15c   :  { %2055 = vmatmul.mubr.f32.gmra.mxu0 %v5334_v42  ;;  %v4162_v61 = vadd.f32 %v949_v5, %v356_v32  ;;  %v390_v25 = vpop.f32.mrf.mxu0 }
 0x15d   :  { %2296 = vmatmul.mubr.f32.gmra.mxu1 %v5330_v58  ;;  %2061 = vmatprep.mubr.f32.mxu0 %v5335_v59  ;;  %v951_v39 = vpop.f32.mrf.mxu1 }
 0x15e   :  { %2302 = vmatprep.mubr.f32.mxu1 %v5331_v14  ;;  %v4167_v12 = vadd.f32 %v951_v39, %v358_v41 }
 0x160   :  { %2063 = vmatmul.mubr.f32.gmra.mxu0 %v5336_v31  ;;  %v404_v35 = vpop.f32.mrf.mxu0 }
 0x161   :  { %2304 = vmatmul.mubr.f32.gmra.mxu1 %v5332_v27  ;;  %2069 = vmatprep.mubr.f32.mxu0 %v5337_v21  ;;  %v957_v47 = vpop.f32.mrf.mxu1 }
 0x162   :  { %2310 = vmatprep.mubr.f32.mxu1 %v5333_v6  ;;  %v4173_v63 = vadd.f32 %v957_v47, %v372_v26  ;;  %v406_v24 = vpop.f32.mrf.mxu0 }
 0x163   :  { %v959_v56 = vpop.f32.mrf.mxu1 }
 0x164   :  { %2071 = vmatmul.mubr.f32.gmra.mxu0 %v5338_v18  ;;  %v4176_v13 = vadd.f32 %v959_v56, %v374_v46 }
 0x165   :  { %2312 = vmatmul.mubr.f32.gmra.mxu1 %v5334_v42  ;;  %2077 = vmatprep.mubr.f32.mxu0 %v5339_v16 }
 0x166   :  { %2318 = vmatprep.mubr.f32.mxu1 %v5335_v59  ;;  %v420_v55 = vpop.f32.mrf.mxu0 }
 0x167   :  { %v965_v7 = vpop.f32.mrf.mxu1 }
 0x168   :  { %2079 = vmatmul.mubr.f32.gmra.mxu0 %v5340_v33  ;;  %v4182_v2 = vadd.f32 %v965_v7, %v388_v43  ;;  %v422_v53 = vpop.f32.mrf.mxu0 }
 0x169   :  { %2320 = vmatmul.mubr.f32.gmra.mxu1 %v5336_v31  ;;  %2085 = vmatprep.mubr.f32.mxu0 %v5341_v17  ;;  %v967_v3 = vpop.f32.mrf.mxu1 }
 0x16a   :  { %2326 = vmatprep.mubr.f32.mxu1 %v5337_v21  ;;  %v4187_v38 = vadd.f32 %v967_v3, %v390_v25 }
 0x16c   :  { %2087 = vmatmul.mubr.f32.gmra.mxu0 %v5342_v8  ;;  %v436_v22 = vpop.f32.mrf.mxu0 }
 0x16d   :  { %2328 = vmatmul.mubr.f32.gmra.mxu1 %v5338_v18  ;;  %v973_v9 = vpop.f32.mrf.mxu1 }
 0x16e   :  { %2334 = vmatprep.mubr.f32.mxu1 %v5339_v16  ;;  %v4192_v48 = vadd.f32 %v973_v9, %v404_v35  ;;  %v438_v10 = vpop.f32.mrf.mxu0 }
 0x16f   :  { %v975_v4 = vpop.f32.mrf.mxu1 }
 0x170   :  { %v4194_v11 = vadd.f32 %v975_v4, %v406_v24 }
 0x171   :  { %2336 = vmatmul.mubr.f32.gmra.mxu1 %v5340_v33 }
 0x172   :  { %5343 = vst [vmem:[#allocation96_spill] sm:$0xff] %v4194_v11  ;;  %2342 = vmatprep.mubr.f32.mxu1 %v5341_v17  ;;  %v452_v15 = vpop.f32.mrf.mxu0 }
 0x173   :  { %v981_v44 = vpop.f32.mrf.mxu1 }
 0x174   :  { %v4198_v29 = vadd.f32 %v981_v44, %v420_v55  ;;  %v454_v49 = vpop.f32.mrf.mxu0 }
 0x175   :  { %2344 = vmatmul.mubr.f32.gmra.mxu1 %v5342_v8  ;;  %v983_v54 = vpop.f32.mrf.mxu1 }
 0x176   :  { %5344 = vst [vmem:[#allocation65_spill] sm:$0xff] %v4198_v29  ;;  %v4201_v40 = vadd.f32 %v983_v54, %v422_v53 }
 0x178   :  { %5345 = vst [vmem:[#allocation100_spill] sm:$0xff] %v4201_v40  ;;  %v468_v36 = vpop.f32.mrf.mxu0 }
 0x179   :  { %v989_v32 = vpop.f32.mrf.mxu1 }
 0x17a   :  { %v4203_v37 = vadd.f32 %v989_v32, %v436_v22  ;;  %v470_v51 = vpop.f32.mrf.mxu0 }
 0x17b   :  { %v991_v41 = vpop.f32.mrf.mxu1 }
 0x17c   :  { %5346 = vst [vmem:[#allocation102_spill] sm:$0xff] %v4203_v37  ;;  %v4205_v28 = vadd.f32 %v991_v41, %v438_v10 }
 0x17e   :  { %5347 = vst [vmem:[#allocation69_spill] sm:$0xff] %v4205_v28  ;;  %v484_v52 = vpop.f32.mrf.mxu0 }
 0x17f   :  { %v997_v58 = vpop.f32.mrf.mxu1 }
 0x180   :  { %v4207_v26 = vadd.f32 %v997_v58, %v452_v15  ;;  %v486_v14 = vpop.f32.mrf.mxu0 }
 0x181   :  { %v999_v1 = vpop.f32.mrf.mxu1 }
 0x182   :  { %5348 = vst [vmem:[#allocation104_spill] sm:$0xff] %v4207_v26  ;;  %v4209_v46 = vadd.f32 %v999_v1, %v454_v49 }
 0x184   :  { %5349 = vst [vmem:[#allocation71_spill] sm:$0xff] %v4209_v46  ;;  %v500_v50 = vpop.f32.mrf.mxu0 }
 0x185   :  { %v1005_v27 = vpop.f32.mrf.mxu1 }
 0x186   :  { %v4211_v6 = vadd.f32 %v1005_v27, %v468_v36  ;;  %v502_v43 = vpop.f32.mrf.mxu0 }
 0x187   :  { %v1007_v5 = vpop.f32.mrf.mxu1 }
 0x188   :  { %5350 = vst [vmem:[#allocation73_spill] sm:$0xff] %v4211_v6  ;;  %v4213_v42 = vadd.f32 %v1007_v5, %v470_v51 }
 0x18a   :  { %5351 = vst [vmem:[#allocation75_spill] sm:$0xff] %v4213_v42  ;;  %v516_v25 = vpop.f32.mrf.mxu0 }
 0x18b   :  { %v1013_v59 = vpop.f32.mrf.mxu1 }
 0x18c   :  { %v4215_v39 = vadd.f32 %v1013_v59, %v484_v52  ;;  %v518_v31 = vpop.f32.mrf.mxu0 }
 0x18d   :  { %v1015_v35 = vpop.f32.mrf.mxu1 }
 0x18e   :  { %5352 = vst [vmem:[#allocation77_spill] sm:$0xff] %v4215_v39  ;;  %v4217_v21 = vadd.f32 %v1015_v35, %v486_v14 }
 0x190   :  { %5353 = vst [vmem:[#allocation79_spill] sm:$0xff] %v4217_v21  ;;  %v4219_v47 = vpop.f32.mrf.mxu0 }
 0x191   :  { %v1021_v24 = vpop.f32.mrf.mxu1 }
 0x192   :  { %v4221_v56 = vadd.f32 %v1021_v24, %v500_v50  ;;  %v4223_v16 = vpop.f32.mrf.mxu0 }
 0x193   :  { %v1023_v18 = vpop.f32.mrf.mxu1 }
 0x194   :  { %5354 = vst [vmem:[#allocation81_spill] sm:$0xff] %v4221_v56  ;;  %v4225_v55 = vadd.f32 %v1023_v18, %v502_v43 }
 0x196   :  { %5355 = vst [vmem:[#allocation83_spill] sm:$0xff] %v4225_v55  ;;  %v1029_v7 = vpop.f32.mrf.mxu1 }
 0x197   :  { %v4227_v33 = vadd.f32 %v1029_v7, %v516_v25  ;;  %v4229_v53 = vpop.f32.mrf.mxu0 }
 0x198   :  { %v1031_v17 = vpop.f32.mrf.mxu1 }
 0x199   :  { %5356 = vst [vmem:[#allocation85_spill] sm:$0xff] %v4227_v33  ;;  %v4231_v3 = vadd.f32 %v1031_v17, %v518_v31  ;;  %v4233_v8 = vpop.f32.mrf.mxu0 }
 0x19b   :  { %5357 = vst [vmem:[#allocation109_spill] sm:$0xff] %v4231_v3 }
 0x19c   :  { %v4235_v22 = vpop.f32.mrf.mxu1 }
 0x19d   :  { %v4237_v9 = vpop.f32.mrf.mxu0 }
 0x19e   :  { %v4241_v4 = vpop.f32.mrf.mxu1 }
 0x19f   :  { %v4239_v10 = vpop.f32.mrf.mxu0 }
 0x1a2   :  { %v4243_v15 = vpop.f32.mrf.mxu0 }
 0x1a3   :  { %v4245_v44 = vpop.f32.mrf.mxu1 }
 0x1a4   :  { %v4247_v49 = vpop.f32.mrf.mxu0 }
 0x1a5   :  { %v4249_v54 = vpop.f32.mrf.mxu1 }
 0x1a8   :  { %v4251_v36 = vpop.f32.mrf.mxu0 }
 0x1a9   :  { %v4253_v32 = vpop.f32.mrf.mxu1 }
 0x1aa   :  { %v4255_v51 = vpop.f32.mrf.mxu0 }
 0x1ab   :  { %v4257_v41 = vpop.f32.mrf.mxu1 }
 0x1ae   :  { %v4259_v52 = vpop.f32.mrf.mxu0 }
 0x1af   :  { %v4261_v58 = vpop.f32.mrf.mxu1 }
 0x1b0   :  { %v4263_v14 = vpop.f32.mrf.mxu0 }
 0x1b1   :  { %v4265_v1 = vpop.f32.mrf.mxu1 }
 0x1b4   :  { %v4267_v50 = vpop.f32.mrf.mxu0 }
 0x1b5   :  { %v4269_v27 = vpop.f32.mrf.mxu1 }
 0x1b6   :  { %v4271_v43 = vpop.f32.mrf.mxu0 }
 0x1b7   :  { %v4273_v5 = vpop.f32.mrf.mxu1 }
 0x1ba   :  { %v4275_v25 = vpop.f32.mrf.mxu0 }
 0x1bb   :  { %v4277_v59 = vpop.f32.mrf.mxu1 }
 0x1bc   :  { %v4279_v31 = vpop.f32.mrf.mxu0 }
 0x1bd   :  { %v4281_v35 = vpop.f32.mrf.mxu1 }
 0x1c0   :  { %v4283_v24 = vpop.f32.mrf.mxu0 }
 0x1c1   :  { %v4285_v18 = vpop.f32.mrf.mxu1 }
 0x1c2   :  { %v4287_v7 = vpop.f32.mrf.mxu0 }
 0x1c3   :  { %5358 = vst [vmem:[#allocation11_spill] sm:$0xff] %v4287_v7  ;;  %v4289_v17 = vpop.f32.mrf.mxu1 }
 0x1c6   :  { %v4291_v3 = vpop.f32.mrf.mxu0 }
 0x1c7   :  { %5359 = vst [vmem:[#allocation97_spill] sm:$0xff] %v4291_v3  ;;  %v4293_v33 = vpop.f32.mrf.mxu1 }
 0x1c8   :  { %v4295_v55 = vpop.f32.mrf.mxu0 }
 0x1c9   :  { %5360 = vst [vmem:[#allocation13_spill] sm:$0xff] %v4295_v55  ;;  %v4297_v56 = vpop.f32.mrf.mxu1 }
 0x1cc   :  { %v4299_v21 = vpop.f32.mrf.mxu0 }
 0x1cd   :  { %5361 = vst [vmem:[#allocation99_spill] sm:$0xff] %v4299_v21  ;;  %v4301_v39 = vpop.f32.mrf.mxu1 }
 0x1ce   :  { %5362 = vst [vmem:[#allocation15_spill] sm:$0xff] %v4301_v39  ;;  %v4303_v42 = vpop.f32.mrf.mxu0 }
 0x1cf   :  { %5363 = vst [vmem:[#allocation112_spill] sm:$0xff] %v4303_v42  ;;  %v4305_v6 = vpop.f32.mrf.mxu1 }
 0x1d0   :  { %5364 = vst [vmem:[#allocation17_spill] sm:$0xff] %v4305_v6 }
 0x1d2   :  { %v4307_v46 = vpop.f32.mrf.mxu0 }
 0x1d3   :  { %5365 = vst [vmem:[#allocation115_spill] sm:$0xff] %v4307_v46  ;;  %v4309_v26 = vpop.f32.mrf.mxu1 }
 0x1d4   :  { %5366 = vst [vmem:[#allocation105_spill] sm:$0xff] %v4309_v26  ;;  %v4311_v28 = vpop.f32.mrf.mxu0 }
 0x1d5   :  { %5367 = vst [vmem:[#allocation20_spill] sm:$0xff] %v4311_v28  ;;  %v4313_v37 = vpop.f32.mrf.mxu1 }
 0x1d6   :  { %5368 = vst [vmem:[#allocation106_spill] sm:$0xff] %v4313_v37 }
 0x1d8   :  { %v4315_v40 = vpop.f32.mrf.mxu0 }
 0x1d9   :  { %5369 = vst [vmem:[#allocation119_spill] sm:$0xff] %v4315_v40  ;;  %v4317_v55 = vpop.f32.mrf.mxu1 }
 0x1da   :  { %5370 = vst [vmem:[#allocation107_spill] sm:$0xff] %v4317_v55  ;;  %v4319_v3 = vpop.f32.mrf.mxu0 }
 0x1db   :  { %5371 = vst [vmem:[#allocation23_spill] sm:$0xff] %v4319_v3  ;;  %v4321_v21 = vpop.f32.mrf.mxu1 }
 0x1dc   :  { %5372 = vst [vmem:[#allocation122_spill] sm:$0xff] %v4321_v21 }
 0x1de   :  { %v4323_v29 = vpop.f32.mrf.mxu0 }
 0x1df   :  { %5373 = vst [vmem:[#allocation127_spill] sm:$0xff] %v4323_v29  ;;  %v4325_v42 = vpop.f32.mrf.mxu1 }
 0x1e0   :  { %5374 = vst [vmem:[#allocation34_spill] sm:$0xff] %v4325_v42  ;;  %v4327_v6 = vpop.f32.mrf.mxu0 }
 0x1e1   :  { %5375 = vst [vmem:[#allocation12_spill] sm:$0xff] %v4327_v6  ;;  %v4329_v46 = vpop.f32.mrf.mxu1 }
 0x1e2   :  { %5376 = vst [vmem:[#allocation36_spill] sm:$0xff] %v4329_v46 }
 0x1e4   :  { %v4331_v26 = vpop.f32.mrf.mxu0 }
 0x1e5   :  { %5377 = vst [vmem:[#allocation14_spill] sm:$0xff] %v4331_v26  ;;  %v4333_v28 = vpop.f32.mrf.mxu1  ;;  %v1233_v26 = vadd.f32 %v4219_v47, %v4112_v45  ;;  %v1245_v45 = vadd.f32 %v4233_v8, %v4127_v34 }
 0x1e6   :  { %5378 = vst [vmem:[#allocation129_spill] sm:$0xff] %v4333_v28  ;;  %v4335_v37 = vpop.f32.mrf.mxu0 }
 0x1e7   :  { %5379 = vst [vmem:[#allocation38_spill] sm:$0xff] %v4335_v37  ;;  %v4337_v40 = vpop.f32.mrf.mxu1 }
 0x1e8   :  { %5380 = vst [vmem:[#allocation16_spill] sm:$0xff] %v4337_v40 }
 0x1ea   :  { %v4339_v55 = vpop.f32.mrf.mxu0 }
 0x1eb   :  { %5381 = vst [vmem:[#allocation130_spill] sm:$0xff] %v4339_v55  ;;  %v4341_v3 = vpop.f32.mrf.mxu1  ;;  %v1235_v55 = vadd.f32 %v4223_v16, %v4115_v60 }
 0x1ec   :  { %5382 = vst [vmem:[#allocation40_spill] sm:$0xff] %v4341_v3  ;;  %v4343_v21 = vpop.f32.mrf.mxu0  ;;  %v1524_v3 = vadd.f32 %v4235_v22, %v1233_v26  ;;  %v1253_v22 = vadd.f32 %v4237_v9, %v4133_v30  ;;  %v1263_v30 = vadd.f32 %v4243_v15, %v4142_v62  ;;  %v1273_v62 = vadd.f32 %v4251_v36, %v4153_v0 }
 0x1ed   :  { %5383 = vst [vmem:[#allocation18_spill] sm:$0xff] %v4343_v21  ;;  %v4345_v29 = vpop.f32.mrf.mxu1  ;;  %v1283_v0 = vadd.f32 %v4259_v52, %v4162_v61  ;;  %v1293_v61 = vadd.f32 %v4267_v50, %v4173_v63  ;;  %v1303_v63 = vadd.f32 %v4275_v25, %v4182_v2  ;;  %v1313_v2 = vadd.f32 %v4283_v24, %v4192_v48  ;;  %v5394_v24 = vld [vmem:[#allocation17_spill] sm:$0xff] }
 0x1ee   :  { %5384 = vst [vmem:[#allocation42_spill] sm:$0xff] %v4345_v29  ;;  %v1526_v29 = vadd.f32 %v4241_v4, %v1235_v55  ;;  %v1548_v34 = vadd.f32 %v4253_v32, %v1253_v22 }
 0x1f0   :  { %v1968_v42 = vpop.f32.mrf.mxu0 }
 0x1f1   :  { %v4347_v6 = vpop.f32.mrf.mxu1 }
 0x1f2   :  { %5385 = vst [vmem:[#allocation19_spill] sm:$0xff] %v4347_v6  ;;  %v1970_v46 = vpop.f32.mrf.mxu0  ;;  %v1243_v6 = vadd.f32 %v4229_v53, %v4122_v20 }
 0x1f3   :  { %v4349_v39 = vpop.f32.mrf.mxu1 }
 0x1f4   :  { %5386 = vst [vmem:[#allocation44_spill] sm:$0xff] %v4349_v39  ;;  %v1976_v37 = vpop.f32.mrf.mxu0  ;;  %v1969_v39 = vadd.f32 %v1968_v42, %v1524_v3  ;;  %v1536_v47 = vadd.f32 %v4245_v44, %v1243_v6  ;;  %v1255_v3 = vadd.f32 %v4239_v10, %v4136_v23  ;;  %v1265_v23 = vadd.f32 %v4247_v49, %v4147_v19 }
 0x1f5   :  { %v4353_v28 = vpop.f32.mrf.mxu1  ;;  %v1560_v10 = vadd.f32 %v4261_v58, %v1263_v30  ;;  %v1275_v19 = vadd.f32 %v4255_v51, %v4156_v57  ;;  %v1572_v49 = vadd.f32 %v4269_v27, %v1273_v62  ;;  %v1285_v57 = vadd.f32 %v4263_v14, %v4167_v12 }
 0x1f6   :  { %5387 = vst [vmem:[#allocation21_spill] sm:$0xff] %v4353_v28  ;;  %v1978_v21 = vpop.f32.mrf.mxu0  ;;  %v1971_v28 = vadd.f32 %v1970_v46, %v1526_v29  ;;  %v1977_v20 = vadd.f32 %v1976_v37, %v1536_v47  ;;  %v1562_v15 = vadd.f32 %v4265_v1, %v1265_v23  ;;  %v1584_v51 = vadd.f32 %v4277_v59, %v1283_v0 }
 0x1f7   :  { %v4358_v40 = vpop.f32.mrf.mxu1  ;;  %v1574_v36 = vadd.f32 %v4273_v5, %v1275_v19  ;;  %v1586_v52 = vadd.f32 %v4281_v35, %v1285_v57  ;;  %v1295_v12 = vadd.f32 %v4271_v43, %v4176_v13  ;;  %v1596_v14 = vadd.f32 %v4285_v18, %v1293_v61  ;;  %v5399_v57 = vld [vmem:[#allocation99_spill] sm:$0xff] }
 0x1f8   :  { %5388 = vst [vmem:[#allocation133_spill] sm:$0xff] %v4358_v40  ;;  %v1984_v7 = vpop.f32.mrf.mxu0  ;;  %v1538_v40 = vadd.f32 %v4249_v54, %v1245_v45  ;;  %v1305_v13 = vadd.f32 %v4279_v31, %v4187_v38  ;;  %v1608_v43 = vadd.f32 %v4293_v33, %v1303_v63  ;;  %v5391_v31 = vld [vmem:[#allocation15_spill] sm:$0xff] }
 0x1f9   :  { %v2225_v11 = vpop.f32.mrf.mxu1  ;;  %v1985_v37 = vadd.f32 %v1984_v7, %v1548_v34  ;;  %v1598_v50 = vadd.f32 %v4289_v17, %v1295_v12  ;;  %v1620_v33 = vadd.f32 %v5391_v31, %v1313_v2  ;;  %v5405_v63 = vld [vmem:[#allocation115_spill] sm:$0xff] }
 0x1fa   :  { %v2226_v60 = vadd.f32 %v2225_v11, %v1969_v39  ;;  %v1986_v16 = vpop.f32.mrf.mxu0  ;;  %v1979_v6 = vadd.f32 %v1978_v21, %v1538_v40  ;;  %v1550_v39 = vadd.f32 %v4257_v41, %v1255_v3  ;;  %v1610_v25 = vadd.f32 %v4297_v56, %v1305_v13 }
 0x1fb   :  { %v2227_v26 = vpop.f32.mrf.mxu1 }
 0x1fc   :  { %2350 = vst [vmem:[#allocation7] sm:$0xff] %v2226_v60  ;;  %v2228_v55 = vadd.f32 %v2227_v26, %v1971_v28  ;;  %v1992_v42 = vpop.f32.mrf.mxu0  ;;  %v1987_v40 = vadd.f32 %v1986_v16, %v1550_v39 }
 0x1fd   :  { %v2233_v53 = vpop.f32.mrf.mxu1  ;;  %v1993_v54 = vadd.f32 %v1992_v42, %v1560_v10 }
 0x1fe   :  { %2351 = vst [vmem:[#allocation7 + $0x8] sm:$0xff] %v2228_v55  ;;  %v2234_v11 = vadd.f32 %v2233_v53, %v1977_v20  ;;  %v1994_v29 = vpop.f32.mrf.mxu0 }
 0x1ff   :  { %v2235_v46 = vpop.f32.mrf.mxu1  ;;  %v1995_v58 = vadd.f32 %v1994_v29, %v1562_v15 }
 0x200   :  { %2352 = vst [vmem:[#allocation7 + $0x10] sm:$0xff] %v2234_v11  ;;  %v2236_v28 = vadd.f32 %v2235_v46, %v1979_v6  ;;  %v2000_v8 = vpop.f32.mrf.mxu0 }
 0x201   :  { %v2241_v9 = vpop.f32.mrf.mxu1  ;;  %v2001_v1 = vadd.f32 %v2000_v8, %v1572_v49 }
 0x202   :  { %2353 = vst [vmem:[#allocation7 + $0x18] sm:$0xff] %v2236_v28  ;;  %v2242_v21 = vadd.f32 %v2241_v9, %v1985_v37  ;;  %v2002_v4 = vpop.f32.mrf.mxu0 }
 0x203   :  { %v2243_v44 = vpop.f32.mrf.mxu1  ;;  %v2003_v27 = vadd.f32 %v2002_v4, %v1574_v36 }
 0x204   :  { %2354 = vst [vmem:[#allocation7 + $0x20] sm:$0xff] %v2242_v21  ;;  %v2244_v32 = vadd.f32 %v2243_v44, %v1987_v40  ;;  %v2008_v41 = vpop.f32.mrf.mxu0  ;;  %v5389_v40 = vld [vmem:[#allocation96_spill] sm:$0xff]  ;;  %v5390_v21 = vld [vmem:[#allocation11_spill] sm:$0xff] }
 0x205   :  { %v2249_v7 = vpop.f32.mrf.mxu1  ;;  %v2009_v5 = vadd.f32 %v2008_v41, %v1584_v51  ;;  %v1315_v38 = vadd.f32 %v5390_v21, %v5389_v40  ;;  %v5411_v40 = vld [vmem:[#allocation119_spill] sm:$0xff] }
 0x206   :  { %2355 = vst [vmem:[#allocation7 + $0x28] sm:$0xff] %v2244_v32  ;;  %v2250_v45 = vadd.f32 %v2249_v7, %v1993_v54  ;;  %v2010_v47 = vpop.f32.mrf.mxu0  ;;  %v5392_v54 = vld [vmem:[#allocation65_spill] sm:$0xff] }
 0x207   :  { %v2251_v60 = vpop.f32.mrf.mxu1  ;;  %v2011_v59 = vadd.f32 %v2010_v47, %v1586_v52  ;;  %v5393_v32 = vld [vmem:[#allocation97_spill] sm:$0xff]  ;;  %v1622_v56 = vadd.f32 %v5394_v24, %v1315_v38  ;;  %v5412_v38 = vld [vmem:[#allocation36_spill] sm:$0xff] }
 0x208   :  { %2356 = vst [vmem:[#allocation7 + $0x30] sm:$0xff] %v2250_v45  ;;  %v2252_v16 = vadd.f32 %v2251_v60, %v1995_v58  ;;  %v2016_v26 = vpop.f32.mrf.mxu0  ;;  %v1323_v48 = vadd.f32 %v5393_v32, %v5392_v54  ;;  %v5395_v58 = vld [vmem:[#allocation100_spill] sm:$0xff]  ;;  %v5396_v45 = vld [vmem:[#allocation13_spill] sm:$0xff]  ;;  %v5414_v54 = vld [vmem:[#allocation23_spill] sm:$0xff] }
 0x209   :  { %v2257_v22 = vpop.f32.mrf.mxu1  ;;  %v2017_v35 = vadd.f32 %v2016_v26, %v1596_v14  ;;  %v1325_v47 = vadd.f32 %v5396_v45, %v5395_v58  ;;  %v5397_v60 = vld [vmem:[#allocation105_spill] sm:$0xff]  ;;  %v5417_v58 = vld [vmem:[#allocation127_spill] sm:$0xff] }
 0x20a   :  { %2357 = vst [vmem:[#allocation7 + $0x38] sm:$0xff] %v2252_v16  ;;  %v2258_v20 = vadd.f32 %v2257_v22, %v2001_v1  ;;  %v2018_v55 = vpop.f32.mrf.mxu0  ;;  %v1632_v0 = vadd.f32 %v5397_v60, %v1323_v48  ;;  %v5398_v22 = vld [vmem:[#allocation102_spill] sm:$0xff]  ;;  %v5415_v48 = vld [vmem:[#allocation129_spill] sm:$0xff] }
 0x20b   :  { %v2259_v42 = vpop.f32.mrf.mxu1  ;;  %v2019_v18 = vadd.f32 %v2018_v55, %v1598_v50  ;;  %v1333_v51 = vadd.f32 %v5399_v57, %v5398_v22  ;;  %v5420_v22 = vld [vmem:[#allocation12_spill] sm:$0xff] }
 0x20c   :  { %2358 = vst [vmem:[#allocation7 + $0x40] sm:$0xff] %v2258_v20  ;;  %v2260_v53 = vadd.f32 %v2259_v42, %v2003_v27  ;;  %v2024_v3 = vpop.f32.mrf.mxu0  ;;  %v5400_v27 = vld [vmem:[#allocation106_spill] sm:$0xff] }
 0x20d   :  { %v2265_v34 = vpop.f32.mrf.mxu1  ;;  %v2025_v17 = vadd.f32 %v2024_v3, %v1608_v43  ;;  %v1634_v20 = vadd.f32 %v5400_v27, %v1325_v47  ;;  %v5418_v47 = vld [vmem:[#allocation16_spill] sm:$0xff] }
 0x20e   :  { %2359 = vst [vmem:[#allocation7 + $0x48] sm:$0xff] %v2260_v53  ;;  %v2266_v6 = vadd.f32 %v2265_v34, %v2009_v5  ;;  %v2026_v11 = vpop.f32.mrf.mxu0  ;;  %v5401_v5 = vld [vmem:[#allocation69_spill] sm:$0xff]  ;;  %v5402_v53 = vld [vmem:[#allocation112_spill] sm:$0xff]  ;;  %v5403_v34 = vld [vmem:[#allocation107_spill] sm:$0xff] }
 0x20f   :  { %v2267_v29 = vpop.f32.mrf.mxu1  ;;  %v2027_v4 = vadd.f32 %v2026_v11, %v1610_v25  ;;  %v1335_v3 = vadd.f32 %v5402_v53, %v5401_v5  ;;  %v1644_v12 = vadd.f32 %v5403_v34, %v1333_v51  ;;  %v5421_v51 = vld [vmem:[#allocation40_spill] sm:$0xff]  ;;  %v5423_v5 = vld [vmem:[#allocation14_spill] sm:$0xff] }
 0x210   :  { %2360 = vst [vmem:[#allocation7 + $0x50] sm:$0xff] %v2266_v6  ;;  %v2268_v46 = vadd.f32 %v2267_v29, %v2011_v59  ;;  %v2032_v30 = vpop.f32.mrf.mxu0  ;;  %v5404_v29 = vld [vmem:[#allocation104_spill] sm:$0xff] }
 0x211   :  { %v2273_v39 = vpop.f32.mrf.mxu1  ;;  %v2033_v41 = vadd.f32 %v2032_v30, %v1620_v33  ;;  %v1343_v50 = vadd.f32 %v5405_v63, %v5404_v29  ;;  %v5427_v63 = vld [vmem:[#allocation19_spill] sm:$0xff] }
 0x212   :  { %2361 = vst [vmem:[#allocation7 + $0x58] sm:$0xff] %v2268_v46  ;;  %v2274_v37 = vadd.f32 %v2273_v39, %v2017_v35  ;;  %v2034_v28 = vpop.f32.mrf.mxu0  ;;  %v5406_v35 = vld [vmem:[#allocation122_spill] sm:$0xff] }
 0x213   :  { %v2275_v8 = vpop.f32.mrf.mxu1  ;;  %v2035_v36 = vadd.f32 %v2034_v28, %v1622_v56  ;;  %v1646_v46 = vadd.f32 %v5406_v35, %v1335_v3  ;;  %v5424_v3 = vld [vmem:[#allocation42_spill] sm:$0xff] }
 0x214   :  { %2362 = vst [vmem:[#allocation7 + $0x60] sm:$0xff] %v2274_v37  ;;  %v2276_v9 = vadd.f32 %v2275_v8, %v2019_v18  ;;  %v2040_v23 = vpop.f32.mrf.mxu0  ;;  %v5407_v18 = vld [vmem:[#allocation71_spill] sm:$0xff]  ;;  %v5408_v37 = vld [vmem:[#allocation20_spill] sm:$0xff]  ;;  %v5409_v8 = vld [vmem:[#allocation34_spill] sm:$0xff] }
 0x215   :  { %v2281_v10 = vpop.f32.mrf.mxu1  ;;  %v2041_v55 = vadd.f32 %v2040_v23, %v1632_v0  ;;  %v1345_v28 = vadd.f32 %v5408_v37, %v5407_v18  ;;  %v1656_v2 = vadd.f32 %v5409_v8, %v1343_v50  ;;  %v5430_v37 = vld [vmem:[#allocation44_spill] sm:$0xff] }
 0x216   :  { %2363 = vst [vmem:[#allocation7 + $0x68] sm:$0xff] %v2276_v9  ;;  %v2282_v44 = vadd.f32 %v2281_v10, %v2025_v17  ;;  %v2042_v62 = vpop.f32.mrf.mxu0  ;;  %v5410_v10 = vld [vmem:[#allocation73_spill] sm:$0xff] }
 0x217   :  { %v2283_v15 = vpop.f32.mrf.mxu1  ;;  %v2043_v14 = vadd.f32 %v2042_v62, %v1634_v20  ;;  %v1353_v21 = vadd.f32 %v5411_v40, %v5410_v10  ;;  %v1658_v31 = vadd.f32 %v5412_v38, %v1345_v28  ;;  %v5433_v10 = vld [vmem:[#allocation21_spill] sm:$0xff] }
 0x218   :  { %2364 = vst [vmem:[#allocation7 + $0x70] sm:$0xff] %v2282_v44  ;;  %v2284_v7 = vadd.f32 %v2283_v15, %v2027_v4  ;;  %v2048_v19 = vpop.f32.mrf.mxu0  ;;  %v5413_v15 = vld [vmem:[#allocation75_spill] sm:$0xff] }
 0x219   :  { %v2289_v49 = vpop.f32.mrf.mxu1  ;;  %v2049_v30 = vadd.f32 %v2048_v19, %v1644_v12  ;;  %v1355_v32 = vadd.f32 %v5414_v54, %v5413_v15  ;;  %v1668_v24 = vadd.f32 %v5415_v48, %v1353_v21 }
 0x21a   :  { %2365 = vst [vmem:[#allocation7 + $0x78] sm:$0xff] %v2284_v7  ;;  %v2290_v1 = vadd.f32 %v2289_v49, %v2033_v41  ;;  %v2050_v16 = vpop.f32.mrf.mxu0  ;;  %v5416_v49 = vld [vmem:[#allocation77_spill] sm:$0xff] }
 0x21b   :  { %v2291_v26 = vpop.f32.mrf.mxu1  ;;  %v2051_v25 = vadd.f32 %v2050_v16, %v1646_v46  ;;  %v1363_v45 = vadd.f32 %v5417_v58, %v5416_v49  ;;  %v1670_v60 = vadd.f32 %v5418_v47, %v1355_v32 }
 0x21c   :  { %2366 = vst [vmem:[#allocation7 + $0x80] sm:$0xff] %v2290_v1  ;;  %v2292_v42 = vadd.f32 %v2291_v26, %v2035_v36  ;;  %v2056_v61 = vpop.f32.mrf.mxu0  ;;  %v5419_v26 = vld [vmem:[#allocation79_spill] sm:$0xff] }
 0x21d   :  { %v2297_v52 = vpop.f32.mrf.mxu1  ;;  %v2057_v33 = vadd.f32 %v2056_v61, %v1656_v2  ;;  %v1365_v57 = vadd.f32 %v5420_v22, %v5419_v26  ;;  %v1680_v27 = vadd.f32 %v5421_v51, %v1363_v45 }
 0x21e   :  { %2367 = vst [vmem:[#allocation7 + $0x88] sm:$0xff] %v2292_v42  ;;  %v2298_v59 = vadd.f32 %v2297_v52, %v2041_v55  ;;  %v2058_v6 = vpop.f32.mrf.mxu0  ;;  %v5422_v52 = vld [vmem:[#allocation81_spill] sm:$0xff] }
 0x21f   :  { %v2299_v11 = vpop.f32.mrf.mxu1  ;;  %v2059_v56 = vadd.f32 %v2058_v6, %v1658_v31  ;;  %v1373_v53 = vadd.f32 %v5423_v5, %v5422_v52  ;;  %v1682_v34 = vadd.f32 %v5424_v3, %v1365_v57  ;;  %v5425_v6 = vld [vmem:[#allocation83_spill] sm:$0xff] }
 0x220   :  { %2368 = vst [vmem:[#allocation7 + $0x90] sm:$0xff] %v2298_v59  ;;  %v2300_v39 = vadd.f32 %v2299_v11, %v2043_v14  ;;  %v2064_v13 = vpop.f32.mrf.mxu0  ;;  %v5426_v11 = vld [vmem:[#allocation38_spill] sm:$0xff] }
 0x221   :  { %v2305_v43 = vpop.f32.mrf.mxu1  ;;  %v2065_v0 = vadd.f32 %v2064_v13, %v1668_v24  ;;  %v1375_v29 = vadd.f32 %v5426_v11, %v5425_v6  ;;  %v1692_v50 = vadd.f32 %v5427_v63, %v1373_v53  ;;  %v5428_v13 = vld [vmem:[#allocation85_spill] sm:$0xff] }
 0x222   :  { %2369 = vst [vmem:[#allocation7 + $0x98] sm:$0xff] %v2300_v39  ;;  %v2306_v17 = vadd.f32 %v2305_v43, %v2049_v30  ;;  %v2066_v9 = vpop.f32.mrf.mxu0  ;;  %v5429_v43 = vld [vmem:[#allocation130_spill] sm:$0xff] }
 0x223   :  { %v2307_v23 = vpop.f32.mrf.mxu1  ;;  %v2067_v20 = vadd.f32 %v2066_v9, %v1670_v60  ;;  %v1383_v18 = vadd.f32 %v5429_v43, %v5428_v13  ;;  %v1694_v28 = vadd.f32 %v5430_v37, %v1375_v29  ;;  %v5432_v9 = vld [vmem:[#allocation18_spill] sm:$0xff] }
 0x224   :  { %2370 = vst [vmem:[#allocation7 + $0xa0] sm:$0xff] %v2306_v17  ;;  %v2308_v4 = vadd.f32 %v2307_v23, %v2051_v25  ;;  %v2072_v44 = vpop.f32.mrf.mxu0  ;;  %v5431_v17 = vld [vmem:[#allocation109_spill] sm:$0xff] }
 0x225   :  { %v2313_v62 = vpop.f32.mrf.mxu1  ;;  %v2073_v12 = vadd.f32 %v2072_v44, %v1680_v27  ;;  %v1385_v23 = vadd.f32 %v5432_v9, %v5431_v17  ;;  %v1704_v40 = vadd.f32 %v5433_v10, %v1383_v18 }
 0x226   :  { %2371 = vst [vmem:[#allocation7 + $0xa8] sm:$0xff] %v2308_v4  ;;  %v2314_v41 = vadd.f32 %v2313_v62, %v2057_v33  ;;  %v2074_v7 = vpop.f32.mrf.mxu0  ;;  %v5434_v4 = vld [vmem:[#allocation133_spill] sm:$0xff] }
 0x227   :  { %v2315_v19 = vpop.f32.mrf.mxu1  ;;  %v2075_v35 = vadd.f32 %v2074_v7, %v1682_v34  ;;  %v1706_v44 = vadd.f32 %v5434_v4, %v1385_v23 }
 0x228   :  { %2372 = vst [vmem:[#allocation7 + $0xb0] sm:$0xff] %v2314_v41  ;;  %v2316_v36 = vadd.f32 %v2315_v19, %v2059_v56  ;;  %v2080_v1 = vpop.f32.mrf.mxu0 }
 0x229   :  { %v2321_v16 = vpop.f32.mrf.mxu1  ;;  %v2081_v8 = vadd.f32 %v2080_v1, %v1692_v50 }
 0x22a   :  { %2373 = vst [vmem:[#allocation7 + $0xb8] sm:$0xff] %v2316_v36  ;;  %v2322_v55 = vadd.f32 %v2321_v16, %v2065_v0  ;;  %v2082_v42 = vpop.f32.mrf.mxu0 }
 0x22b   :  { %v2323_v61 = vpop.f32.mrf.mxu1  ;;  %v2083_v21 = vadd.f32 %v2082_v42, %v1694_v28 }
 0x22c   :  { %2374 = vst [vmem:[#allocation7 + $0xc0] sm:$0xff] %v2322_v55  ;;  %v2324_v14 = vadd.f32 %v2323_v61, %v2067_v20  ;;  %v2088_v30 = vpop.f32.mrf.mxu0 }
 0x22d   :  { %v2329_v59 = vpop.f32.mrf.mxu1  ;;  %v2089_v62 = vadd.f32 %v2088_v30, %v1704_v40 }
 0x22e   :  { %2375 = vst [vmem:[#allocation7 + $0xc8] sm:$0xff] %v2324_v14  ;;  %v2330_v46 = vadd.f32 %v2329_v59, %v2073_v12  ;;  %v2090_v31 = vpop.f32.mrf.mxu0 }
 0x22f   :  { %v2331_v39 = vpop.f32.mrf.mxu1  ;;  %v2091_v32 = vadd.f32 %v2090_v31, %v1706_v44 }
 0x230   :  { %2376 = vst [vmem:[#allocation7 + $0xd0] sm:$0xff] %v2330_v46  ;;  %v2332_v2 = vadd.f32 %v2331_v39, %v2075_v35 }
 0x231   :  { %v2337_v25 = vpop.f32.mrf.mxu1 }
 0x232   :  { %2377 = vst [vmem:[#allocation7 + $0xd8] sm:$0xff] %v2332_v2  ;;  %v2338_v38 = vadd.f32 %v2337_v25, %v2081_v8 }
 0x233   :  { %v2339_v33 = vpop.f32.mrf.mxu1 }
 0x234   :  { %2378 = vst [vmem:[#allocation7 + $0xe0] sm:$0xff] %v2338_v38  ;;  %v2340_v15 = vadd.f32 %v2339_v33, %v2083_v21 }
 0x235   :  { %v2345_v54 = vpop.f32.mrf.mxu1 }
 0x236   :  { %2379 = vst [vmem:[#allocation7 + $0xe8] sm:$0xff] %v2340_v15  ;;  %v2346_v48 = vadd.f32 %v2345_v54, %v2089_v62 }
 0x237   :  { %v2347_v24 = vpop.f32.mrf.mxu1 }
 0x238   :  { %2380 = vst [vmem:[#allocation7 + $0xf0] sm:$0xff] %v2346_v48  ;;  %v2348_v56 = vadd.f32 %v2347_v24, %v2091_v32 }
 0x23a   :  { %2381 = vst [vmem:[#allocation7 + $0xf8] sm:$0xff] %v2348_v56 }
 0x23b   :  { %2456 = shalt.err (!%p2453_p0)
}
 0x23c   :  { %2393 = dma.vmem_to_hbm [thread:$0]  %s2388_s1, 4096, %s4459_s2, [#allocation4], %s2472_s12, %s2472_s12, %s2473_s13  }
 0x23d   :  { %2469 = dma.done.wait [#allocation4], 4096  }
 0x23e   :  { %2470 = vsyncadd [#allocation4], 4294963200 }
 0x23f   :  { %2397 = vsyncpa [#allocation3], 1 }
 0x240   :  { %2398 = vsyncpa [#allocation6], 1 }
 0x241   :  { %2399 = vsyncpa [#allocation4], 1 }

</bundles_post_ra>
